<compile_context>
chip_gen: v7x
topology: tpu7x:2x2x1
jax: 0.10.0
libtpu: 0.0.40
codegen_flags: <defaults>
</compile_context>

<pallas_src>
import functools

import jax
import jax.numpy as jnp
import numpy as np
from jax import lax
from jax.experimental import pallas as pl
from jax.experimental.pallas import tpu as pltpu

_LANES = 128


def _round_up(x, m):
    return ((x + m - 1) // m) * m


def _pad_c(c):
    return _round_up(c, _LANES)


# ----------------------------------------------------------------------------
# Pallas kernel: direct 3x3 conv (9 shifted matmuls) + BN + shortcut + ReLU
# ----------------------------------------------------------------------------
def _make_conv3x3_kernel(stride, Ho, Wo, apply_relu, residual_mode):
    """residual_mode in {None, "identity", "proj"}.

    Ref shapes (per grid step, one batch element):
      x_ref : (1, s, s, Hp2, Wp2, Cin_p) bf16  padded input, split into stride
                                               phases (phase = padded idx % s)
      w_ref : (3, 3, Cin_p, Cout_p)      bf16  conv weight (grid-invariant)
      sc/bi : (1, Cout_p)                f32   folded-BN scale / bias
      proj   extras: xr (1, Ho*Wo, Cin_p) bf16, ws (Cin_p, Cout_p) bf16,
                     scs/bis (1, Cout_p) f32   (fused 1x1 conv + BN shortcut)
      ident  extra : xr (1, Ho*Wo, Cout_p)     (added as-is, cast to f32)
      o_ref : (1, Ho*Wo, Cout_p)
    """
    K = 3

    def kernel(*refs):
        if residual_mode == "proj":
            x_ref, w_ref, sc_ref, bi_ref, xr_ref, ws_ref, scs_ref, bis_ref, o_ref = refs
        elif residual_mode == "identity":
            x_ref, w_ref, sc_ref, bi_ref, xr_ref, o_ref = refs
        else:
            x_ref, w_ref, sc_ref, bi_ref, o_ref = refs

        cout = w_ref.shape[-1]
        acc = jnp.zeros((Ho * Wo, cout), jnp.float32)

        # 9 shifted matmuls; tap (kh, kw) reads padded input row s*ho + kh,
        # i.e. phase (kh % s, kw % s) at offset (kh // s, kw // s).
        for kh in range(K):
            for kw in range(K):
                ph, pw = kh % stride, kw % stride
                oh, ow = kh // stride, kw // stride
                xs = x_ref[0, ph, pw, pl.ds(oh, Ho), pl.ds(ow, Wo), :]
                xs = xs.reshape(Ho * Wo, xs.shape[-1])
                acc = acc + jnp.dot(xs, w_ref[kh, kw],
                                    preferred_element_type=jnp.float32)

        # Folded-BN epilogue: y = conv(x) * scale + bias (per channel).
        y = acc * sc_ref[...] + bi_ref[...]

        if residual_mode == "proj":
            # Fused 1x1 shortcut: bn_s(conv1x1(x_strided)).
            xr = xr_ref[0]
            res = jnp.dot(xr, ws_ref[...], preferred_element_type=jnp.float32)
            y = y + (res * scs_ref[...] + bis_ref[...])
        elif residual_mode == "identity":
            y = y + xr_ref[0].astype(jnp.float32)

        if apply_relu:
            y = jnp.maximum(y, 0.0)
        o_ref[0] = y.astype(o_ref.dtype)

    return kernel


def _conv3x3_call(x6, w4, sc, bi, *, stride, Ho, Wo, relu, out_dtype,
                  identity_res=None, proj=None):
    """x6: (B, s, s, Hp2, Wp2, Cin_p) bf16; returns (B, Ho*Wo, Cout_p)."""
    B = x6.shape[0]
    Cin_p = x6.shape[-1]
    Cp = w4.shape[-1]
    HoWo = Ho * Wo

    residual_mode = ("proj" if proj is not None
                     else ("identity" if identity_res is not None else None))
    kernel = _make_conv3x3_kernel(stride, Ho, Wo, relu, residual_mode)

    vec_spec = pl.BlockSpec((1, Cp), lambda b: (0, 0))
    in_specs = [
        pl.BlockSpec((1,) + x6.shape[1:], lambda b: (b, 0, 0, 0, 0, 0)),
        pl.BlockSpec(w4.shape, lambda b: (0, 0, 0, 0)),   # weight: grid-invariant
        vec_spec, vec_spec,
    ]
    args = [x6, w4, sc, bi]

    if residual_mode == "proj":
        xr, ws2d, scs, bis = proj
        in_specs += [
            pl.BlockSpec((1, HoWo, xr.shape[-1]), lambda b: (b, 0, 0)),
            pl.BlockSpec(ws2d.shape, lambda b: (0, 0)),
            vec_spec, vec_spec,
        ]
        args += [xr, ws2d, scs, bis]
    elif residual_mode == "identity":
        in_specs += [pl.BlockSpec((1, HoWo, identity_res.shape[-1]),
                                  lambda b: (b, 0, 0))]
        args += [identity_res]

    out_spec = pl.BlockSpec((1, HoWo, Cp), lambda b: (b, 0, 0))
    out_itemsize = jnp.dtype(out_dtype).itemsize

    # Per-step VMEM working set (bf16 blocks, f32 epilogue value).
    blk_bytes = (int(np.prod(x6.shape[1:])) * 2
                 + int(np.prod(w4.shape)) * 2
                 + 4 * Cp * 4
                 + HoWo * Cp * out_itemsize)
    if residual_mode == "proj":
        blk_bytes += HoWo * proj[0].shape[-1] * 2 + int(np.prod(proj[1].shape)) * 2
    elif residual_mode == "identity":
        blk_bytes += HoWo * identity_res.shape[-1] * identity_res.dtype.itemsize
    acc_bytes = HoWo * Cp * 4
    # Cap at 48 MiB: leaves headroom on v7x (64 MiB/TC); far above need here.
    vmem_limit = int(min(max(3 * blk_bytes + acc_bytes + (4 << 20), 16 << 20),
                         48 << 20))

    flops = 2 * B * HoWo * 9 * Cin_p * Cp
    if residual_mode == "proj":
        flops += 2 * B * HoWo * proj[0].shape[-1] * Cp
    cost = pl.CostEstimate(flops=int(flops), transcendentals=0,
                           bytes_accessed=int(B * blk_bytes))

    return pl.pallas_call(
        kernel,
        out_shape=jax.ShapeDtypeStruct((B, HoWo, Cp), out_dtype),
        grid_spec=pltpu.PrefetchScalarGridSpec(
            num_scalar_prefetch=0,
            grid=(B,),
            in_specs=in_specs,
            out_specs=out_spec,
        ),
        compiler_params=pltpu.CompilerParams(
            dimension_semantics=("parallel",),   # batch shards across v7x TCs
            vmem_limit_bytes=vmem_limit,
        ),
        cost_estimate=cost,
    )(*args)


# ----------------------------------------------------------------------------
# Plain-JAX glue: input phase-split / weight & BN prep
# ----------------------------------------------------------------------------
def _prep_conv_input(x_nhwc, stride):
    """Zero-pad (spatial by 1, channels to 128 lanes) and split into stride
    phases.  Single pass over x; returns (B, s, s, Hp2, Wp2, Cp) bf16."""
    B, H, W, C = x_nhwc.shape
    Cp = _pad_c(C)
    Hp, Wp = H + 2, W + 2
    Hp2 = -(-Hp // stride)
    Wp2 = -(-Wp // stride)
    x = jnp.pad(x_nhwc.astype(jnp.bfloat16),
                ((0, 0),
                 (1, 1 + stride * Hp2 - Hp),
                 (1, 1 + stride * Wp2 - Wp),
                 (0, Cp - C)))
    x = x.reshape(B, Hp2, stride, Wp2, stride, Cp)
    return jnp.transpose(x, (0, 2, 4, 1, 3, 5))


def _prep_weight3x3(w_oihw, cin_p, cout_p):
    Cout, Cin, K, _ = w_oihw.shape
    w = jnp.transpose(w_oihw, (2, 3, 1, 0)).astype(jnp.bfloat16)   # (K,K,Cin,Cout)
    return jnp.pad(w, ((0, 0), (0, 0), (0, cin_p - Cin), (0, cout_p - Cout)))


def _prep_weight1x1(w_oihw, cin_p, cout_p):
    Cout, Cin = w_oihw.shape[:2]
    w = jnp.transpose(w_oihw[:, :, 0, 0], (1, 0)).astype(jnp.bfloat16)  # (Cin,Cout)
    return jnp.pad(w, ((0, cin_p - Cin), (0, cout_p - Cout)))


def _fold_bn(bn, eps=1e-5):
    scale = bn["gamma"] * lax.rsqrt(bn["var"] + eps)
    bias = bn["beta"] - bn["mean"] * scale
    return scale, bias


def _pad_vec(v, n):
    return jnp.zeros((1, n), jnp.float32).at[0, :v.shape[0]].set(
        v.astype(jnp.float32))


# ----------------------------------------------------------------------------
# BasicBlock forward
# ----------------------------------------------------------------------------
@functools.partial(jax.jit, static_argnums=(2,))
def basic_block_forward(x_nchw, params, stride):
    out_dtype = x_nchw.dtype
    x = jnp.transpose(x_nchw, (0, 2, 3, 1))          # NCHW -> NHWC (f32 kept)
    B, H, W, Cin = x.shape
    Cout = params["w1"].shape[0]
    Ho = (H - 1) // stride + 1
    Wo = (W - 1) // stride + 1
    Cin_p, Cout_p = _pad_c(Cin), _pad_c(Cout)

    # ---- conv1 (3x3, stride) + bn1 + relu -> bf16, channel-padded -----------
    x6 = _prep_conv_input(x, stride)
    w1 = _prep_weight3x3(params["w1"], Cin_p, Cout_p)
    s1, b1 = _fold_bn(params["bn1"])
    out1 = _conv3x3_call(x6, w1, _pad_vec(s1, Cout_p), _pad_vec(b1, Cout_p),
                         stride=stride, Ho=Ho, Wo=Wo, relu=True,
                         out_dtype=jnp.bfloat16)      # (B, Ho*Wo, Cout_p)

    # ---- conv2 (3x3, stride 1) + bn2 + shortcut + relu, all fused ----------
    y6 = _prep_conv_input(out1.reshape(B, Ho, Wo, Cout_p), 1)
    w2 = _prep_weight3x3(params["w2"], Cout_p, Cout_p)
    s2, b2 = _fold_bn(params["bn2"])

    use_proj = (stride != 1) or (Cin != Cout)
    if use_proj:
        # Fused 1x1 projection shortcut: strided x rows + ws + folded bn_s.
        xs = x[:, ::stride, ::stride, :].astype(jnp.bfloat16)
        xs = jnp.pad(xs, ((0, 0), (0, 0), (0, 0), (0, Cin_p - Cin)))
        xs = xs.reshape(B, Ho * Wo, Cin_p)
        ws2d = _prep_weight1x1(params["ws"], Cin_p, Cout_p)
        ss, bs = _fold_bn(params["bns"])
        out = _conv3x3_call(y6, w2, _pad_vec(s2, Cout_p), _pad_vec(b2, Cout_p),
                            stride=1, Ho=Ho, Wo=Wo, relu=True,
                            out_dtype=out_dtype,
                            proj=(xs, ws2d, _pad_vec(ss, Cout_p),
                                  _pad_vec(bs, Cout_p)))
    else:
        # Identity shortcut: add the original (f32) input, no extra rounding.
        ident = jnp.pad(x, ((0, 0), (0, 0), (0, 0), (0, Cout_p - Cin)))
        ident = ident.reshape(B, H * W, Cout_p)
        out = _conv3x3_call(y6, w2, _pad_vec(s2, Cout_p), _pad_vec(b2, Cout_p),
                            stride=1, Ho=Ho, Wo=Wo, relu=True,
                            out_dtype=out_dtype, identity_res=ident)

    out = out[:, :, :Cout].reshape(B, Ho, Wo, Cout)
    return jnp.transpose(out, (0, 3, 1, 2))           # NHWC -> NCHW


# ----------------------------------------------------------------------------
# Pure-JAX reference (lax conv, f32) for correctness check
# ----------------------------------------------------------------------------
def reference_forward(x_nchw, params, stride):
    x = jnp.transpose(x_nchw, (0, 2, 3, 1))
    dn = ("NHWC", "HWIO", "NHWC")

    def conv(x, w_oihw, s, pad):
        w = jnp.transpose(w_oihw, (2, 3, 1, 0))
        return lax.conv_general_dilated(
            x, w, (s, s), ((pad, pad), (pad, pad)), dimension_numbers=dn,
            precision=lax.Precision.HIGHEST)

    def bn(x, p):
        sc, bi = _fold_bn(p)
        return x * sc + bi

    out = jax.nn.relu(bn(conv(x, params["w1"], stride, 1), params["bn1"]))
    out = bn(conv(out, params["w2"], 1, 1), params["bn2"])
    Cin, Cout = params["w1"].shape[1], params["w1"].shape[0]
    if stride != 1 or Cin != Cout:
        sc = bn(conv(x, params["ws"], stride, 0), params["bns"])
    else:
        sc = x
    out = jax.nn.relu(out + sc)
    return jnp.transpose(out, (0, 3, 1, 2))


# ----------------------------------------------------------------------------
def _make_bn_params(key, c):
    k1, k2, k3, k4 = jax.random.split(key, 4)
    return {
        "gamma": jax.random.uniform(k1, (c,), jnp.float32, 0.5, 1.5),
        "beta": 0.1 * jax.random.normal(k2, (c,), jnp.float32),
        "mean": 0.1 * jax.random.normal(k3, (c,), jnp.float32),
        "var": jax.random.uniform(k4, (c,), jnp.float32, 0.5, 1.5),
    }


if __name__ == "__main__":
    key = jax.random.PRNGKey(0)
    k_proj, k_id = jax.random.split(key)

    # ---- Config 1: projection shortcut (stride=2, Cin != Cout) -------------
    in_channels, out_channels, stride = 4, 8, 2
    B, H, W = 2, 16, 16
    kx, kw1, kw2, kws, kb1, kb2, kbs = jax.random.split(k_proj, 7)
    x = jax.random.normal(kx, (B, in_channels, H, W), jnp.float32)
    params = {
        "w1": 0.1 * jax.random.normal(kw1, (out_channels, in_channels, 3, 3), jnp.float32),
        "w2": 0.1 * jax.random.normal(kw2, (out_channels, out_channels, 3, 3), jnp.float32),
        "ws": 0.1 * jax.random.normal(kws, (out_channels, in_channels, 1, 1), jnp.float32),
        "bn1": _make_bn_params(kb1, out_channels),
        "bn2": _make_bn_params(kb2, out_channels),
        "bns": _make_bn_params(kbs, out_channels),
    }
    out = jax.block_until_ready(basic_block_forward(x, params, stride))
    ref = reference_forward(x, params, stride)
    assert out.shape == (B, out_channels, H // stride, W // stride), out.shape
    np.testing.assert_allclose(np.asarray(out), np.asarray(ref),
                               rtol=3e-2, atol=3e-2)

    # ---- Config 2: identity shortcut (stride=1, Cin == Cout) ---------------
    c2 = 8
    kx2, kw1b, kw2b, kb1b, kb2b = jax.random.split(k_id, 5)
    x2 = jax.random.normal(kx2, (B, c2, H, W), jnp.float32)
    params2 = {
        "w1": 0.1 * jax.random.normal(kw1b, (c2, c2, 3, 3), jnp.float32),
        "w2": 0.1 * jax.random.normal(kw2b, (c2, c2, 3, 3), jnp.float32),
        "bn1": _make_bn_params(kb1b, c2),
        "bn2": _make_bn_params(kb2b, c2),
    }
    out2 = jax.block_until_ready(basic_block_forward(x2, params2, 1))
    ref2 = reference_forward(x2, params2, 1)
    assert out2.shape == (B, c2, H, W), out2.shape
    np.testing.assert_allclose(np.asarray(out2), np.asarray(ref2),
                               rtol=3e-2, atol=3e-2)

    print("KERNEL_OK")
</pallas_src>

<mosaic_0001>
module attributes {stable_mosaic.version = 11 : i64} {
  func.func @kernel(%arg0: i32, %arg1: memref<1x2x2x9x9x128xbf16, #tpu.memory_space<vmem>>, %arg2: memref<3x3x128x128xbf16, #tpu.memory_space<vmem>>, %arg3: memref<1x128xf32, #tpu.memory_space<vmem>>, %arg4: memref<1x128xf32, #tpu.memory_space<vmem>>, %arg5: memref<1x64x128xbf16, #tpu.memory_space<vmem>>) attributes {dimension_semantics = [#tpu.dimension_semantics<parallel>], iteration_bounds = array<i64: 2>, scalar_prefetch = 0 : i64, scratch_operands = 0 : i64, tpu.core_type = #tpu.core_type<tc>, window_params = [{transform_indices = @transform_0, window_bounds = array<i64: 1, 2, 2, 9, 9, 128>}, {pipeline_mode = #tpu.pipeline_mode<synchronous>, transform_indices = @transform_1, window_bounds = array<i64: 3, 3, 128, 128>}, {pipeline_mode = #tpu.pipeline_mode<synchronous>, transform_indices = @transform_2, window_bounds = array<i64: 1, 128>}, {pipeline_mode = #tpu.pipeline_mode<synchronous>, transform_indices = @transform_3, window_bounds = array<i64: 1, 128>}, {transform_indices = @transform_4, window_bounds = array<i64: 1, 64, 128>}]} {
    %cst = arith.constant 0.000000e+00 : f32
    %0 = vector.broadcast %cst : f32 to vector<64x128xf32>
    %c0 = arith.constant 0 : index
    %c0_0 = arith.constant 0 : index
    %c0_1 = arith.constant 0 : index
    %c0_2 = arith.constant 0 : index
    %c0_3 = arith.constant 0 : index
    %c0_4 = arith.constant 0 : index
    %1 = vector.load %arg1[%c0, %c0_0, %c0_1, %c0_2, %c0_3, %c0_4] : memref<1x2x2x9x9x128xbf16, #tpu.memory_space<vmem>>, vector<1x1x1x8x8x128xbf16>
    %2 = vector.shape_cast %1 : vector<1x1x1x8x8x128xbf16> to vector<8x8x128xbf16>
    %3 = vector.shape_cast %2 : vector<8x8x128xbf16> to vector<64x128xbf16>
    %c0_5 = arith.constant 0 : index
    %c0_6 = arith.constant 0 : index
    %c0_7 = arith.constant 0 : index
    %c0_8 = arith.constant 0 : index
    %4 = vector.load %arg2[%c0_5, %c0_6, %c0_7, %c0_8] : memref<3x3x128x128xbf16, #tpu.memory_space<vmem>>, vector<1x1x128x128xbf16>
    %5 = vector.shape_cast %4 : vector<1x1x128x128xbf16> to vector<128x128xbf16>
    %cst_9 = arith.constant dense<0.000000e+00> : vector<64x128xf32>
    %6 = tpu.matmul %3, %5, %cst_9 {dimension_numbers = #tpu.dot_dimension_numbers<[1], [0], [0], [1], [0, 0, 1, 1], [], []>} : vector<64x128xbf16>, vector<128x128xbf16>, vector<64x128xf32> -> vector<64x128xf32>
    %7 = arith.addf %0, %6 : vector<64x128xf32>
    %c0_10 = arith.constant 0 : index
    %c0_11 = arith.constant 0 : index
    %c1 = arith.constant 1 : index
    %c0_12 = arith.constant 0 : index
    %c0_13 = arith.constant 0 : index
    %c0_14 = arith.constant 0 : index
    %8 = vector.load %arg1[%c0_10, %c0_11, %c1, %c0_12, %c0_13, %c0_14] : memref<1x2x2x9x9x128xbf16, #tpu.memory_space<vmem>>, vector<1x1x1x8x8x128xbf16>
    %9 = vector.shape_cast %8 : vector<1x1x1x8x8x128xbf16> to vector<8x8x128xbf16>
    %10 = vector.shape_cast %9 : vector<8x8x128xbf16> to vector<64x128xbf16>
    %c0_15 = arith.constant 0 : index
    %c1_16 = arith.constant 1 : index
    %c0_17 = arith.constant 0 : index
    %c0_18 = arith.constant 0 : index
    %11 = vector.load %arg2[%c0_15, %c1_16, %c0_17, %c0_18] : memref<3x3x128x128xbf16, #tpu.memory_space<vmem>>, vector<1x1x128x128xbf16>
    %12 = vector.shape_cast %11 : vector<1x1x128x128xbf16> to vector<128x128xbf16>
    %cst_19 = arith.constant dense<0.000000e+00> : vector<64x128xf32>
    %13 = tpu.matmul %10, %12, %cst_19 {dimension_numbers = #tpu.dot_dimension_numbers<[1], [0], [0], [1], [0, 0, 1, 1], [], []>} : vector<64x128xbf16>, vector<128x128xbf16>, vector<64x128xf32> -> vector<64x128xf32>
    %14 = arith.addf %7, %13 : vector<64x128xf32>
    %c0_20 = arith.constant 0 : index
    %c0_21 = arith.constant 0 : index
    %c0_22 = arith.constant 0 : index
    %c0_23 = arith.constant 0 : index
    %c1_24 = arith.constant 1 : index
    %c0_25 = arith.constant 0 : index
    %15 = vector.load %arg1[%c0_20, %c0_21, %c0_22, %c0_23, %c1_24, %c0_25] : memref<1x2x2x9x9x128xbf16, #tpu.memory_space<vmem>>, vector<1x1x1x8x8x128xbf16>
    %16 = vector.shape_cast %15 : vector<1x1x1x8x8x128xbf16> to vector<8x8x128xbf16>
    %17 = vector.shape_cast %16 : vector<8x8x128xbf16> to vector<64x128xbf16>
    %c0_26 = arith.constant 0 : index
    %c2 = arith.constant 2 : index
    %c0_27 = arith.constant 0 : index
    %c0_28 = arith.constant 0 : index
    %18 = vector.load %arg2[%c0_26, %c2, %c0_27, %c0_28] : memref<3x3x128x128xbf16, #tpu.memory_space<vmem>>, vector<1x1x128x128xbf16>
    %19 = vector.shape_cast %18 : vector<1x1x128x128xbf16> to vector<128x128xbf16>
    %cst_29 = arith.constant dense<0.000000e+00> : vector<64x128xf32>
    %20 = tpu.matmul %17, %19, %cst_29 {dimension_numbers = #tpu.dot_dimension_numbers<[1], [0], [0], [1], [0, 0, 1, 1], [], []>} : vector<64x128xbf16>, vector<128x128xbf16>, vector<64x128xf32> -> vector<64x128xf32>
    %21 = arith.addf %14, %20 : vector<64x128xf32>
    %c0_30 = arith.constant 0 : index
    %c1_31 = arith.constant 1 : index
    %c0_32 = arith.constant 0 : index
    %c0_33 = arith.constant 0 : index
    %c0_34 = arith.constant 0 : index
    %c0_35 = arith.constant 0 : index
    %22 = vector.load %arg1[%c0_30, %c1_31, %c0_32, %c0_33, %c0_34, %c0_35] : memref<1x2x2x9x9x128xbf16, #tpu.memory_space<vmem>>, vector<1x1x1x8x8x128xbf16>
    %23 = vector.shape_cast %22 : vector<1x1x1x8x8x128xbf16> to vector<8x8x128xbf16>
    %24 = vector.shape_cast %23 : vector<8x8x128xbf16> to vector<64x128xbf16>
    %c1_36 = arith.constant 1 : index
    %c0_37 = arith.constant 0 : index
    %c0_38 = arith.constant 0 : index
    %c0_39 = arith.constant 0 : index
    %25 = vector.load %arg2[%c1_36, %c0_37, %c0_38, %c0_39] : memref<3x3x128x128xbf16, #tpu.memory_space<vmem>>, vector<1x1x128x128xbf16>
    %26 = vector.shape_cast %25 : vector<1x1x128x128xbf16> to vector<128x128xbf16>
    %cst_40 = arith.constant dense<0.000000e+00> : vector<64x128xf32>
    %27 = tpu.matmul %24, %26, %cst_40 {dimension_numbers = #tpu.dot_dimension_numbers<[1], [0], [0], [1], [0, 0, 1, 1], [], []>} : vector<64x128xbf16>, vector<128x128xbf16>, vector<64x128xf32> -> vector<64x128xf32>
    %28 = arith.addf %21, %27 : vector<64x128xf32>
    %c0_41 = arith.constant 0 : index
    %c1_42 = arith.constant 1 : index
    %c1_43 = arith.constant 1 : index
    %c0_44 = arith.constant 0 : index
    %c0_45 = arith.constant 0 : index
    %c0_46 = arith.constant 0 : index
    %29 = vector.load %arg1[%c0_41, %c1_42, %c1_43, %c0_44, %c0_45, %c0_46] : memref<1x2x2x9x9x128xbf16, #tpu.memory_space<vmem>>, vector<1x1x1x8x8x128xbf16>
    %30 = vector.shape_cast %29 : vector<1x1x1x8x8x128xbf16> to vector<8x8x128xbf16>
    %31 = vector.shape_cast %30 : vector<8x8x128xbf16> to vector<64x128xbf16>
    %c1_47 = arith.constant 1 : index
    %c1_48 = arith.constant 1 : index
    %c0_49 = arith.constant 0 : index
    %c0_50 = arith.constant 0 : index
    %32 = vector.load %arg2[%c1_47, %c1_48, %c0_49, %c0_50] : memref<3x3x128x128xbf16, #tpu.memory_space<vmem>>, vector<1x1x128x128xbf16>
    %33 = vector.shape_cast %32 : vector<1x1x128x128xbf16> to vector<128x128xbf16>
    %cst_51 = arith.constant dense<0.000000e+00> : vector<64x128xf32>
    %34 = tpu.matmul %31, %33, %cst_51 {dimension_numbers = #tpu.dot_dimension_numbers<[1], [0], [0], [1], [0, 0, 1, 1], [], []>} : vector<64x128xbf16>, vector<128x128xbf16>, vector<64x128xf32> -> vector<64x128xf32>
    %35 = arith.addf %28, %34 : vector<64x128xf32>
    %c0_52 = arith.constant 0 : index
    %c1_53 = arith.constant 1 : index
    %c0_54 = arith.constant 0 : index
    %c0_55 = arith.constant 0 : index
    %c1_56 = arith.constant 1 : index
    %c0_57 = arith.constant 0 : index
    %36 = vector.load %arg1[%c0_52, %c1_53, %c0_54, %c0_55, %c1_56, %c0_57] : memref<1x2x2x9x9x128xbf16, #tpu.memory_space<vmem>>, vector<1x1x1x8x8x128xbf16>
    %37 = vector.shape_cast %36 : vector<1x1x1x8x8x128xbf16> to vector<8x8x128xbf16>
    %38 = vector.shape_cast %37 : vector<8x8x128xbf16> to vector<64x128xbf16>
    %c1_58 = arith.constant 1 : index
    %c2_59 = arith.constant 2 : index
    %c0_60 = arith.constant 0 : index
    %c0_61 = arith.constant 0 : index
    %39 = vector.load %arg2[%c1_58, %c2_59, %c0_60, %c0_61] : memref<3x3x128x128xbf16, #tpu.memory_space<vmem>>, vector<1x1x128x128xbf16>
    %40 = vector.shape_cast %39 : vector<1x1x128x128xbf16> to vector<128x128xbf16>
    %cst_62 = arith.constant dense<0.000000e+00> : vector<64x128xf32>
    %41 = tpu.matmul %38, %40, %cst_62 {dimension_numbers = #tpu.dot_dimension_numbers<[1], [0], [0], [1], [0, 0, 1, 1], [], []>} : vector<64x128xbf16>, vector<128x128xbf16>, vector<64x128xf32> -> vector<64x128xf32>
    %42 = arith.addf %35, %41 : vector<64x128xf32>
    %c0_63 = arith.constant 0 : index
    %c0_64 = arith.constant 0 : index
    %c0_65 = arith.constant 0 : index
    %c1_66 = arith.constant 1 : index
    %c0_67 = arith.constant 0 : index
    %c0_68 = arith.constant 0 : index
    %43 = vector.load %arg1[%c0_63, %c0_64, %c0_65, %c1_66, %c0_67, %c0_68] : memref<1x2x2x9x9x128xbf16, #tpu.memory_space<vmem>>, vector<1x1x1x8x8x128xbf16>
    %44 = vector.shape_cast %43 : vector<1x1x1x8x8x128xbf16> to vector<8x8x128xbf16>
    %45 = vector.shape_cast %44 : vector<8x8x128xbf16> to vector<64x128xbf16>
    %c2_69 = arith.constant 2 : index
    %c0_70 = arith.constant 0 : index
    %c0_71 = arith.constant 0 : index
    %c0_72 = arith.constant 0 : index
    %46 = vector.load %arg2[%c2_69, %c0_70, %c0_71, %c0_72] : memref<3x3x128x128xbf16, #tpu.memory_space<vmem>>, vector<1x1x128x128xbf16>
    %47 = vector.shape_cast %46 : vector<1x1x128x128xbf16> to vector<128x128xbf16>
    %cst_73 = arith.constant dense<0.000000e+00> : vector<64x128xf32>
    %48 = tpu.matmul %45, %47, %cst_73 {dimension_numbers = #tpu.dot_dimension_numbers<[1], [0], [0], [1], [0, 0, 1, 1], [], []>} : vector<64x128xbf16>, vector<128x128xbf16>, vector<64x128xf32> -> vector<64x128xf32>
    %49 = arith.addf %42, %48 : vector<64x128xf32>
    %c0_74 = arith.constant 0 : index
    %c0_75 = arith.constant 0 : index
    %c1_76 = arith.constant 1 : index
    %c1_77 = arith.constant 1 : index
    %c0_78 = arith.constant 0 : index
    %c0_79 = arith.constant 0 : index
    %50 = vector.load %arg1[%c0_74, %c0_75, %c1_76, %c1_77, %c0_78, %c0_79] : memref<1x2x2x9x9x128xbf16, #tpu.memory_space<vmem>>, vector<1x1x1x8x8x128xbf16>
    %51 = vector.shape_cast %50 : vector<1x1x1x8x8x128xbf16> to vector<8x8x128xbf16>
    %52 = vector.shape_cast %51 : vector<8x8x128xbf16> to vector<64x128xbf16>
    %c2_80 = arith.constant 2 : index
    %c1_81 = arith.constant 1 : index
    %c0_82 = arith.constant 0 : index
    %c0_83 = arith.constant 0 : index
    %53 = vector.load %arg2[%c2_80, %c1_81, %c0_82, %c0_83] : memref<3x3x128x128xbf16, #tpu.memory_space<vmem>>, vector<1x1x128x128xbf16>
    %54 = vector.shape_cast %53 : vector<1x1x128x128xbf16> to vector<128x128xbf16>
    %cst_84 = arith.constant dense<0.000000e+00> : vector<64x128xf32>
    %55 = tpu.matmul %52, %54, %cst_84 {dimension_numbers = #tpu.dot_dimension_numbers<[1], [0], [0], [1], [0, 0, 1, 1], [], []>} : vector<64x128xbf16>, vector<128x128xbf16>, vector<64x128xf32> -> vector<64x128xf32>
    %56 = arith.addf %49, %55 : vector<64x128xf32>
    %c0_85 = arith.constant 0 : index
    %c0_86 = arith.constant 0 : index
    %c0_87 = arith.constant 0 : index
    %c1_88 = arith.constant 1 : index
    %c1_89 = arith.constant 1 : index
    %c0_90 = arith.constant 0 : index
    %57 = vector.load %arg1[%c0_85, %c0_86, %c0_87, %c1_88, %c1_89, %c0_90] : memref<1x2x2x9x9x128xbf16, #tpu.memory_space<vmem>>, vector<1x1x1x8x8x128xbf16>
    %58 = vector.shape_cast %57 : vector<1x1x1x8x8x128xbf16> to vector<8x8x128xbf16>
    %59 = vector.shape_cast %58 : vector<8x8x128xbf16> to vector<64x128xbf16>
    %c2_91 = arith.constant 2 : index
    %c2_92 = arith.constant 2 : index
    %c0_93 = arith.constant 0 : index
    %c0_94 = arith.constant 0 : index
    %60 = vector.load %arg2[%c2_91, %c2_92, %c0_93, %c0_94] : memref<3x3x128x128xbf16, #tpu.memory_space<vmem>>, vector<1x1x128x128xbf16>
    %61 = vector.shape_cast %60 : vector<1x1x128x128xbf16> to vector<128x128xbf16>
    %cst_95 = arith.constant dense<0.000000e+00> : vector<64x128xf32>
    %62 = tpu.matmul %59, %61, %cst_95 {dimension_numbers = #tpu.dot_dimension_numbers<[1], [0], [0], [1], [0, 0, 1, 1], [], []>} : vector<64x128xbf16>, vector<128x128xbf16>, vector<64x128xf32> -> vector<64x128xf32>
    %63 = arith.addf %56, %62 : vector<64x128xf32>
    %c0_96 = arith.constant 0 : index
    %c0_97 = arith.constant 0 : index
    %64 = vector.load %arg3[%c0_96, %c0_97] : memref<1x128xf32, #tpu.memory_space<vmem>>, vector<1x128xf32>
    %65 = vector.broadcast %64 : vector<1x128xf32> to vector<64x128xf32>
    %66 = arith.mulf %63, %65 : vector<64x128xf32>
    %c0_98 = arith.constant 0 : index
    %c0_99 = arith.constant 0 : index
    %67 = vector.load %arg4[%c0_98, %c0_99] : memref<1x128xf32, #tpu.memory_space<vmem>>, vector<1x128xf32>
    %68 = vector.broadcast %67 : vector<1x128xf32> to vector<64x128xf32>
    %69 = arith.addf %66, %68 : vector<64x128xf32>
    %cst_100 = arith.constant 0.000000e+00 : f32
    %70 = vector.broadcast %cst_100 : f32 to vector<64x128xf32>
    %71 = arith.maximumf %69, %70 : vector<64x128xf32>
    %72 = arith.truncf %71 : vector<64x128xf32> to vector<64x128xbf16>
    %c0_101 = arith.constant 0 : index
    %c0_102 = arith.constant 0 : index
    %c0_103 = arith.constant 0 : index
    %73 = vector.load %arg5[%c0_101, %c0_102, %c0_103] : memref<1x64x128xbf16, #tpu.memory_space<vmem>>, vector<1x64x128xbf16>
    %74 = vector.shape_cast %73 : vector<1x64x128xbf16> to vector<64x128xbf16>
    %75 = vector.shape_cast %72 : vector<64x128xbf16> to vector<1x64x128xbf16>
    tpu.vector_store %arg5[%c0_101, %c0_102, %c0_103], %75 {strides = array<i32>} : memref<1x64x128xbf16, #tpu.memory_space<vmem>>, vector<1x64x128xbf16>,
    return
  }
  func.func @transform_0(%arg0: i32) -> (i32, i32, i32, i32, i32, i32) {
    %c0_i32 = arith.constant 0 : i32
    %c0_i32_0 = arith.constant 0 : i32
    %c0_i32_1 = arith.constant 0 : i32
    %c0_i32_2 = arith.constant 0 : i32
    %c0_i32_3 = arith.constant 0 : i32
    %c0_i32_4 = arith.constant 0 : i32
    return %arg0, %c0_i32, %c0_i32_0, %c0_i32_1, %c0_i32_2, %c0_i32_3 : i32, i32, i32, i32, i32, i32
  }
  func.func @transform_1(%arg0: i32) -> (i32, i32, i32, i32) {
    %c0_i32 = arith.constant 0 : i32
    %c0_i32_0 = arith.constant 0 : i32
    %c0_i32_1 = arith.constant 0 : i32
    %c0_i32_2 = arith.constant 0 : i32
    %c0_i32_3 = arith.constant 0 : i32
    return %c0_i32, %c0_i32_0, %c0_i32_1, %c0_i32_2 : i32, i32, i32, i32
  }
  func.func @transform_2(%arg0: i32) -> (i32, i32) {
    %c0_i32 = arith.constant 0 : i32
    %c0_i32_0 = arith.constant 0 : i32
    %c0_i32_1 = arith.constant 0 : i32
    return %c0_i32, %c0_i32_0 : i32, i32
  }
  func.func @transform_3(%arg0: i32) -> (i32, i32) {
    %c0_i32 = arith.constant 0 : i32
    %c0_i32_0 = arith.constant 0 : i32
    %c0_i32_1 = arith.constant 0 : i32
    return %c0_i32, %c0_i32_0 : i32, i32
  }
  func.func @transform_4(%arg0: i32) -> (i32, i32, i32) {
    %c0_i32 = arith.constant 0 : i32
    %c0_i32_0 = arith.constant 0 : i32
    %c0_i32_1 = arith.constant 0 : i32
    return %arg0, %c0_i32, %c0_i32_0 : i32, i32, i32
  }
}

module attributes {stable_mosaic.version = 11 : i64} {
  func.func @kernel(%arg0: i32, %arg1: memref<1x1x1x10x10x128xbf16, #tpu.memory_space<vmem>>, %arg2: memref<3x3x128x128xbf16, #tpu.memory_space<vmem>>, %arg3: memref<1x128xf32, #tpu.memory_space<vmem>>, %arg4: memref<1x128xf32, #tpu.memory_space<vmem>>, %arg5: memref<1x64x128xbf16, #tpu.memory_space<vmem>>, %arg6: memref<128x128xbf16, #tpu.memory_space<vmem>>, %arg7: memref<1x128xf32, #tpu.memory_space<vmem>>, %arg8: memref<1x128xf32, #tpu.memory_space<vmem>>, %arg9: memref<1x64x128xf32, #tpu.memory_space<vmem>>) attributes {dimension_semantics = [#tpu.dimension_semantics<parallel>], iteration_bounds = array<i64: 2>, scalar_prefetch = 0 : i64, scratch_operands = 0 : i64, tpu.core_type = #tpu.core_type<tc>, window_params = [{transform_indices = @transform_0, window_bounds = array<i64: 1, 1, 1, 10, 10, 128>}, {pipeline_mode = #tpu.pipeline_mode<synchronous>, transform_indices = @transform_1, window_bounds = array<i64: 3, 3, 128, 128>}, {pipeline_mode = #tpu.pipeline_mode<synchronous>, transform_indices = @transform_2, window_bounds = array<i64: 1, 128>}, {pipeline_mode = #tpu.pipeline_mode<synchronous>, transform_indices = @transform_3, window_bounds = array<i64: 1, 128>}, {transform_indices = @transform_4, window_bounds = array<i64: 1, 64, 128>}, {pipeline_mode = #tpu.pipeline_mode<synchronous>, transform_indices = @transform_5, window_bounds = array<i64: 128, 128>}, {pipeline_mode = #tpu.pipeline_mode<synchronous>, transform_indices = @transform_6, window_bounds = array<i64: 1, 128>}, {pipeline_mode = #tpu.pipeline_mode<synchronous>, transform_indices = @transform_7, window_bounds = array<i64: 1, 128>}, {transform_indices = @transform_8, window_bounds = array<i64: 1, 64, 128>}]} {
    %cst = arith.constant 0.000000e+00 : f32
    %0 = vector.broadcast %cst : f32 to vector<64x128xf32>
    %c0 = arith.constant 0 : index
    %c0_0 = arith.constant 0 : index
    %c0_1 = arith.constant 0 : index
    %c0_2 = arith.constant 0 : index
    %c0_3 = arith.constant 0 : index
    %c0_4 = arith.constant 0 : index
    %1 = vector.load %arg1[%c0, %c0_0, %c0_1, %c0_2, %c0_3, %c0_4] : memref<1x1x1x10x10x128xbf16, #tpu.memory_space<vmem>>, vector<1x1x1x8x8x128xbf16>
    %2 = vector.shape_cast %1 : vector<1x1x1x8x8x128xbf16> to vector<8x8x128xbf16>
    %3 = vector.shape_cast %2 : vector<8x8x128xbf16> to vector<64x128xbf16>
    %c0_5 = arith.constant 0 : index
    %c0_6 = arith.constant 0 : index
    %c0_7 = arith.constant 0 : index
    %c0_8 = arith.constant 0 : index
    %4 = vector.load %arg2[%c0_5, %c0_6, %c0_7, %c0_8] : memref<3x3x128x128xbf16, #tpu.memory_space<vmem>>, vector<1x1x128x128xbf16>
    %5 = vector.shape_cast %4 : vector<1x1x128x128xbf16> to vector<128x128xbf16>
    %cst_9 = arith.constant dense<0.000000e+00> : vector<64x128xf32>
    %6 = tpu.matmul %3, %5, %cst_9 {dimension_numbers = #tpu.dot_dimension_numbers<[1], [0], [0], [1], [0, 0, 1, 1], [], []>} : vector<64x128xbf16>, vector<128x128xbf16>, vector<64x128xf32> -> vector<64x128xf32>
    %7 = arith.addf %0, %6 : vector<64x128xf32>
    %c0_10 = arith.constant 0 : index
    %c0_11 = arith.constant 0 : index
    %c0_12 = arith.constant 0 : index
    %c0_13 = arith.constant 0 : index
    %c1 = arith.constant 1 : index
    %c0_14 = arith.constant 0 : index
    %8 = vector.load %arg1[%c0_10, %c0_11, %c0_12, %c0_13, %c1, %c0_14] : memref<1x1x1x10x10x128xbf16, #tpu.memory_space<vmem>>, vector<1x1x1x8x8x128xbf16>
    %9 = vector.shape_cast %8 : vector<1x1x1x8x8x128xbf16> to vector<8x8x128xbf16>
    %10 = vector.shape_cast %9 : vector<8x8x128xbf16> to vector<64x128xbf16>
    %c0_15 = arith.constant 0 : index
    %c1_16 = arith.constant 1 : index
    %c0_17 = arith.constant 0 : index
    %c0_18 = arith.constant 0 : index
    %11 = vector.load %arg2[%c0_15, %c1_16, %c0_17, %c0_18] : memref<3x3x128x128xbf16, #tpu.memory_space<vmem>>, vector<1x1x128x128xbf16>
    %12 = vector.shape_cast %11 : vector<1x1x128x128xbf16> to vector<128x128xbf16>
    %cst_19 = arith.constant dense<0.000000e+00> : vector<64x128xf32>
    %13 = tpu.matmul %10, %12, %cst_19 {dimension_numbers = #tpu.dot_dimension_numbers<[1], [0], [0], [1], [0, 0, 1, 1], [], []>} : vector<64x128xbf16>, vector<128x128xbf16>, vector<64x128xf32> -> vector<64x128xf32>
    %14 = arith.addf %7, %13 : vector<64x128xf32>
    %c0_20 = arith.constant 0 : index
    %c0_21 = arith.constant 0 : index
    %c0_22 = arith.constant 0 : index
    %c0_23 = arith.constant 0 : index
    %c2 = arith.constant 2 : index
    %c0_24 = arith.constant 0 : index
    %15 = vector.load %arg1[%c0_20, %c0_21, %c0_22, %c0_23, %c2, %c0_24] : memref<1x1x1x10x10x128xbf16, #tpu.memory_space<vmem>>, vector<1x1x1x8x8x128xbf16>
    %16 = vector.shape_cast %15 : vector<1x1x1x8x8x128xbf16> to vector<8x8x128xbf16>
    %17 = vector.shape_cast %16 : vector<8x8x128xbf16> to vector<64x128xbf16>
    %c0_25 = arith.constant 0 : index
    %c2_26 = arith.constant 2 : index
    %c0_27 = arith.constant 0 : index
    %c0_28 = arith.constant 0 : index
    %18 = vector.load %arg2[%c0_25, %c2_26, %c0_27, %c0_28] : memref<3x3x128x128xbf16, #tpu.memory_space<vmem>>, vector<1x1x128x128xbf16>
    %19 = vector.shape_cast %18 : vector<1x1x128x128xbf16> to vector<128x128xbf16>
    %cst_29 = arith.constant dense<0.000000e+00> : vector<64x128xf32>
    %20 = tpu.matmul %17, %19, %cst_29 {dimension_numbers = #tpu.dot_dimension_numbers<[1], [0], [0], [1], [0, 0, 1, 1], [], []>} : vector<64x128xbf16>, vector<128x128xbf16>, vector<64x128xf32> -> vector<64x128xf32>
    %21 = arith.addf %14, %20 : vector<64x128xf32>
    %c0_30 = arith.constant 0 : index
    %c0_31 = arith.constant 0 : index
    %c0_32 = arith.constant 0 : index
    %c1_33 = arith.constant 1 : index
    %c0_34 = arith.constant 0 : index
    %c0_35 = arith.constant 0 : index
    %22 = vector.load %arg1[%c0_30, %c0_31, %c0_32, %c1_33, %c0_34, %c0_35] : memref<1x1x1x10x10x128xbf16, #tpu.memory_space<vmem>>, vector<1x1x1x8x8x128xbf16>
    %23 = vector.shape_cast %22 : vector<1x1x1x8x8x128xbf16> to vector<8x8x128xbf16>
    %24 = vector.shape_cast %23 : vector<8x8x128xbf16> to vector<64x128xbf16>
    %c1_36 = arith.constant 1 : index
    %c0_37 = arith.constant 0 : index
    %c0_38 = arith.constant 0 : index
    %c0_39 = arith.constant 0 : index
    %25 = vector.load %arg2[%c1_36, %c0_37, %c0_38, %c0_39] : memref<3x3x128x128xbf16, #tpu.memory_space<vmem>>, vector<1x1x128x128xbf16>
    %26 = vector.shape_cast %25 : vector<1x1x128x128xbf16> to vector<128x128xbf16>
    %cst_40 = arith.constant dense<0.000000e+00> : vector<64x128xf32>
    %27 = tpu.matmul %24, %26, %cst_40 {dimension_numbers = #tpu.dot_dimension_numbers<[1], [0], [0], [1], [0, 0, 1, 1], [], []>} : vector<64x128xbf16>, vector<128x128xbf16>, vector<64x128xf32> -> vector<64x128xf32>
    %28 = arith.addf %21, %27 : vector<64x128xf32>
    %c0_41 = arith.constant 0 : index
    %c0_42 = arith.constant 0 : index
    %c0_43 = arith.constant 0 : index
    %c1_44 = arith.constant 1 : index
    %c1_45 = arith.constant 1 : index
    %c0_46 = arith.constant 0 : index
    %29 = vector.load %arg1[%c0_41, %c0_42, %c0_43, %c1_44, %c1_45, %c0_46] : memref<1x1x1x10x10x128xbf16, #tpu.memory_space<vmem>>, vector<1x1x1x8x8x128xbf16>
    %30 = vector.shape_cast %29 : vector<1x1x1x8x8x128xbf16> to vector<8x8x128xbf16>
    %31 = vector.shape_cast %30 : vector<8x8x128xbf16> to vector<64x128xbf16>
    %c1_47 = arith.constant 1 : index
    %c1_48 = arith.constant 1 : index
    %c0_49 = arith.constant 0 : index
    %c0_50 = arith.constant 0 : index
    %32 = vector.load %arg2[%c1_47, %c1_48, %c0_49, %c0_50] : memref<3x3x128x128xbf16, #tpu.memory_space<vmem>>, vector<1x1x128x128xbf16>
    %33 = vector.shape_cast %32 : vector<1x1x128x128xbf16> to vector<128x128xbf16>
    %cst_51 = arith.constant dense<0.000000e+00> : vector<64x128xf32>
    %34 = tpu.matmul %31, %33, %cst_51 {dimension_numbers = #tpu.dot_dimension_numbers<[1], [0], [0], [1], [0, 0, 1, 1], [], []>} : vector<64x128xbf16>, vector<128x128xbf16>, vector<64x128xf32> -> vector<64x128xf32>
    %35 = arith.addf %28, %34 : vector<64x128xf32>
    %c0_52 = arith.constant 0 : index
    %c0_53 = arith.constant 0 : index
    %c0_54 = arith.constant 0 : index
    %c1_55 = arith.constant 1 : index
    %c2_56 = arith.constant 2 : index
    %c0_57 = arith.constant 0 : index
    %36 = vector.load %arg1[%c0_52, %c0_53, %c0_54, %c1_55, %c2_56, %c0_57] : memref<1x1x1x10x10x128xbf16, #tpu.memory_space<vmem>>, vector<1x1x1x8x8x128xbf16>
    %37 = vector.shape_cast %36 : vector<1x1x1x8x8x128xbf16> to vector<8x8x128xbf16>
    %38 = vector.shape_cast %37 : vector<8x8x128xbf16> to vector<64x128xbf16>
    %c1_58 = arith.constant 1 : index
    %c2_59 = arith.constant 2 : index
    %c0_60 = arith.constant 0 : index
    %c0_61 = arith.constant 0 : index
    %39 = vector.load %arg2[%c1_58, %c2_59, %c0_60, %c0_61] : memref<3x3x128x128xbf16, #tpu.memory_space<vmem>>, vector<1x1x128x128xbf16>
    %40 = vector.shape_cast %39 : vector<1x1x128x128xbf16> to vector<128x128xbf16>
    %cst_62 = arith.constant dense<0.000000e+00> : vector<64x128xf32>
    %41 = tpu.matmul %38, %40, %cst_62 {dimension_numbers = #tpu.dot_dimension_numbers<[1], [0], [0], [1], [0, 0, 1, 1], [], []>} : vector<64x128xbf16>, vector<128x128xbf16>, vector<64x128xf32> -> vector<64x128xf32>
    %42 = arith.addf %35, %41 : vector<64x128xf32>
    %c0_63 = arith.constant 0 : index
    %c0_64 = arith.constant 0 : index
    %c0_65 = arith.constant 0 : index
    %c2_66 = arith.constant 2 : index
    %c0_67 = arith.constant 0 : index
    %c0_68 = arith.constant 0 : index
    %43 = vector.load %arg1[%c0_63, %c0_64, %c0_65, %c2_66, %c0_67, %c0_68] : memref<1x1x1x10x10x128xbf16, #tpu.memory_space<vmem>>, vector<1x1x1x8x8x128xbf16>
    %44 = vector.shape_cast %43 : vector<1x1x1x8x8x128xbf16> to vector<8x8x128xbf16>
    %45 = vector.shape_cast %44 : vector<8x8x128xbf16> to vector<64x128xbf16>
    %c2_69 = arith.constant 2 : index
    %c0_70 = arith.constant 0 : index
    %c0_71 = arith.constant 0 : index
    %c0_72 = arith.constant 0 : index
    %46 = vector.load %arg2[%c2_69, %c0_70, %c0_71, %c0_72] : memref<3x3x128x128xbf16, #tpu.memory_space<vmem>>, vector<1x1x128x128xbf16>
    %47 = vector.shape_cast %46 : vector<1x1x128x128xbf16> to vector<128x128xbf16>
    %cst_73 = arith.constant dense<0.000000e+00> : vector<64x128xf32>
    %48 = tpu.matmul %45, %47, %cst_73 {dimension_numbers = #tpu.dot_dimension_numbers<[1], [0], [0], [1], [0, 0, 1, 1], [], []>} : vector<64x128xbf16>, vector<128x128xbf16>, vector<64x128xf32> -> vector<64x128xf32>
    %49 = arith.addf %42, %48 : vector<64x128xf32>
    %c0_74 = arith.constant 0 : index
    %c0_75 = arith.constant 0 : index
    %c0_76 = arith.constant 0 : index
    %c2_77 = arith.constant 2 : index
    %c1_78 = arith.constant 1 : index
    %c0_79 = arith.constant 0 : index
    %50 = vector.load %arg1[%c0_74, %c0_75, %c0_76, %c2_77, %c1_78, %c0_79] : memref<1x1x1x10x10x128xbf16, #tpu.memory_space<vmem>>, vector<1x1x1x8x8x128xbf16>
    %51 = vector.shape_cast %50 : vector<1x1x1x8x8x128xbf16> to vector<8x8x128xbf16>
    %52 = vector.shape_cast %51 : vector<8x8x128xbf16> to vector<64x128xbf16>
    %c2_80 = arith.constant 2 : index
    %c1_81 = arith.constant 1 : index
    %c0_82 = arith.constant 0 : index
    %c0_83 = arith.constant 0 : index
    %53 = vector.load %arg2[%c2_80, %c1_81, %c0_82, %c0_83] : memref<3x3x128x128xbf16, #tpu.memory_space<vmem>>, vector<1x1x128x128xbf16>
    %54 = vector.shape_cast %53 : vector<1x1x128x128xbf16> to vector<128x128xbf16>
    %cst_84 = arith.constant dense<0.000000e+00> : vector<64x128xf32>
    %55 = tpu.matmul %52, %54, %cst_84 {dimension_numbers = #tpu.dot_dimension_numbers<[1], [0], [0], [1], [0, 0, 1, 1], [], []>} : vector<64x128xbf16>, vector<128x128xbf16>, vector<64x128xf32> -> vector<64x128xf32>
    %56 = arith.addf %49, %55 : vector<64x128xf32>
    %c0_85 = arith.constant 0 : index
    %c0_86 = arith.constant 0 : index
    %c0_87 = arith.constant 0 : index
    %c2_88 = arith.constant 2 : index
    %c2_89 = arith.constant 2 : index
    %c0_90 = arith.constant 0 : index
    %57 = vector.load %arg1[%c0_85, %c0_86, %c0_87, %c2_88, %c2_89, %c0_90] : memref<1x1x1x10x10x128xbf16, #tpu.memory_space<vmem>>, vector<1x1x1x8x8x128xbf16>
    %58 = vector.shape_cast %57 : vector<1x1x1x8x8x128xbf16> to vector<8x8x128xbf16>
    %59 = vector.shape_cast %58 : vector<8x8x128xbf16> to vector<64x128xbf16>
    %c2_91 = arith.constant 2 : index
    %c2_92 = arith.constant 2 : index
    %c0_93 = arith.constant 0 : index
    %c0_94 = arith.constant 0 : index
    %60 = vector.load %arg2[%c2_91, %c2_92, %c0_93, %c0_94] : memref<3x3x128x128xbf16, #tpu.memory_space<vmem>>, vector<1x1x128x128xbf16>
    %61 = vector.shape_cast %60 : vector<1x1x128x128xbf16> to vector<128x128xbf16>
    %cst_95 = arith.constant dense<0.000000e+00> : vector<64x128xf32>
    %62 = tpu.matmul %59, %61, %cst_95 {dimension_numbers = #tpu.dot_dimension_numbers<[1], [0], [0], [1], [0, 0, 1, 1], [], []>} : vector<64x128xbf16>, vector<128x128xbf16>, vector<64x128xf32> -> vector<64x128xf32>
    %63 = arith.addf %56, %62 : vector<64x128xf32>
    %c0_96 = arith.constant 0 : index
    %c0_97 = arith.constant 0 : index
    %64 = vector.load %arg3[%c0_96, %c0_97] : memref<1x128xf32, #tpu.memory_space<vmem>>, vector<1x128xf32>
    %65 = vector.broadcast %64 : vector<1x128xf32> to vector<64x128xf32>
    %66 = arith.mulf %63, %65 : vector<64x128xf32>
    %c0_98 = arith.constant 0 : index
    %c0_99 = arith.constant 0 : index
    %67 = vector.load %arg4[%c0_98, %c0_99] : memref<1x128xf32, #tpu.memory_space<vmem>>, vector<1x128xf32>
    %68 = vector.broadcast %67 : vector<1x128xf32> to vector<64x128xf32>
    %69 = arith.addf %66, %68 : vector<64x128xf32>
    %c0_100 = arith.constant 0 : index
    %c0_101 = arith.constant 0 : index
    %c0_102 = arith.constant 0 : index
    %70 = vector.load %arg5[%c0_100, %c0_101, %c0_102] : memref<1x64x128xbf16, #tpu.memory_space<vmem>>, vector<1x64x128xbf16>
    %71 = vector.shape_cast %70 : vector<1x64x128xbf16> to vector<64x128xbf16>
    %c0_103 = arith.constant 0 : index
    %c0_104 = arith.constant 0 : index
    %72 = vector.load %arg6[%c0_103, %c0_104] : memref<128x128xbf16, #tpu.memory_space<vmem>>, vector<128x128xbf16>
    %cst_105 = arith.constant dense<0.000000e+00> : vector<64x128xf32>
    %73 = tpu.matmul %71, %72, %cst_105 {dimension_numbers = #tpu.dot_dimension_numbers<[1], [0], [0], [1], [0, 0, 1, 1], [], []>} : vector<64x128xbf16>, vector<128x128xbf16>, vector<64x128xf32> -> vector<64x128xf32>
    %c0_106 = arith.constant 0 : index
    %c0_107 = arith.constant 0 : index
    %74 = vector.load %arg7[%c0_106, %c0_107] : memref<1x128xf32, #tpu.memory_space<vmem>>, vector<1x128xf32>
    %75 = vector.broadcast %74 : vector<1x128xf32> to vector<64x128xf32>
    %76 = arith.mulf %73, %75 : vector<64x128xf32>
    %c0_108 = arith.constant 0 : index
    %c0_109 = arith.constant 0 : index
    %77 = vector.load %arg8[%c0_108, %c0_109] : memref<1x128xf32, #tpu.memory_space<vmem>>, vector<1x128xf32>
    %78 = vector.broadcast %77 : vector<1x128xf32> to vector<64x128xf32>
    %79 = arith.addf %76, %78 : vector<64x128xf32>
    %80 = arith.addf %69, %79 : vector<64x128xf32>
    %cst_110 = arith.constant 0.000000e+00 : f32
    %81 = vector.broadcast %cst_110 : f32 to vector<64x128xf32>
    %82 = arith.maximumf %80, %81 : vector<64x128xf32>
    %c0_111 = arith.constant 0 : index
    %c0_112 = arith.constant 0 : index
    %c0_113 = arith.constant 0 : index
    %83 = vector.load %arg9[%c0_111, %c0_112, %c0_113] : memref<1x64x128xf32, #tpu.memory_space<vmem>>, vector<1x64x128xf32>
    %84 = vector.shape_cast %83 : vector<1x64x128xf32> to vector<64x128xf32>
    %85 = vector.shape_cast %82 : vector<64x128xf32> to vector<1x64x128xf32>
    tpu.vector_store %arg9[%c0_111, %c0_112, %c0_113], %85 {strides = array<i32>} : memref<1x64x128xf32, #tpu.memory_space<vmem>>, vector<1x64x128xf32>,
    return
  }
  func.func @transform_0(%arg0: i32) -> (i32, i32, i32, i32, i32, i32) {
    %c0_i32 = arith.constant 0 : i32
    %c0_i32_0 = arith.constant 0 : i32
    %c0_i32_1 = arith.constant 0 : i32
    %c0_i32_2 = arith.constant 0 : i32
    %c0_i32_3 = arith.constant 0 : i32
    %c0_i32_4 = arith.constant 0 : i32
    return %arg0, %c0_i32, %c0_i32_0, %c0_i32_1, %c0_i32_2, %c0_i32_3 : i32, i32, i32, i32, i32, i32
  }
  func.func @transform_1(%arg0: i32) -> (i32, i32, i32, i32) {
    %c0_i32 = arith.constant 0 : i32
    %c0_i32_0 = arith.constant 0 : i32
    %c0_i32_1 = arith.constant 0 : i32
    %c0_i32_2 = arith.constant 0 : i32
    %c0_i32_3 = arith.constant 0 : i32
    return %c0_i32, %c0_i32_0, %c0_i32_1, %c0_i32_2 : i32, i32, i32, i32
  }
  func.func @transform_2(%arg0: i32) -> (i32, i32) {
    %c0_i32 = arith.constant 0 : i32
    %c0_i32_0 = arith.constant 0 : i32
    %c0_i32_1 = arith.constant 0 : i32
    return %c0_i32, %c0_i32_0 : i32, i32
  }
  func.func @transform_3(%arg0: i32) -> (i32, i32) {
    %c0_i32 = arith.constant 0 : i32
    %c0_i32_0 = arith.constant 0 : i32
    %c0_i32_1 = arith.constant 0 : i32
    return %c0_i32, %c0_i32_0 : i32, i32
  }
  func.func @transform_4(%arg0: i32) -> (i32, i32, i32) {
    %c0_i32 = arith.constant 0 : i32
    %c0_i32_0 = arith.constant 0 : i32
    %c0_i32_1 = arith.constant 0 : i32
    return %arg0, %c0_i32, %c0_i32_0 : i32, i32, i32
  }
  func.func @transform_5(%arg0: i32) -> (i32, i32) {
    %c0_i32 = arith.constant 0 : i32
    %c0_i32_0 = arith.constant 0 : i32
    %c0_i32_1 = arith.constant 0 : i32
    return %c0_i32, %c0_i32_0 : i32, i32
  }
  func.func @transform_6(%arg0: i32) -> (i32, i32) {
    %c0_i32 = arith.constant 0 : i32
    %c0_i32_0 = arith.constant 0 : i32
    %c0_i32_1 = arith.constant 0 : i32
    return %c0_i32, %c0_i32_0 : i32, i32
  }
  func.func @transform_7(%arg0: i32) -> (i32, i32) {
    %c0_i32 = arith.constant 0 : i32
    %c0_i32_0 = arith.constant 0 : i32
    %c0_i32_1 = arith.constant 0 : i32
    return %c0_i32, %c0_i32_0 : i32, i32
  }
  func.func @transform_8(%arg0: i32) -> (i32, i32, i32) {
    %c0_i32 = arith.constant 0 : i32
    %c0_i32_0 = arith.constant 0 : i32
    %c0_i32_1 = arith.constant 0 : i32
    return %arg0, %c0_i32, %c0_i32_0 : i32, i32, i32
  }
}

</mosaic_0001>

<bundles_post_ra>
// kernel: basic_block_forward.2
= control target key start
LH: loop header
LB: loop body
LE: loop exit
PB: predicated region body
PF: predicated region fallthrough
CT: control target
= control target key end

     0   :  { %s3091_s15 = smov 0   ;;  %s3462_s0 = inlined_call_operand.vmem [shape: bf16[2,2,2,9,9,128], index: 0, kind: input, shape index: {}]   ;;  %s3463_s1 = inlined_call_operand.vmem [shape: bf16[3,3,128,128], index: 1, kind: input, shape index: {}]   ;;  %s3464_s2 = inlined_call_operand.vmem [shape: f32[1,128], index: 2, kind: input, shape index: {}]   ;;  %s3465_s3 = inlined_call_operand.vmem [shape: f32[1,128], index: 3, kind: input, shape index: {}]   ;;  %s3466_s4 = inlined_call_operand.vmem [shape: bf16[2,64,128], index: 4, kind: output, shape index: {}]  }
   0x1 LB: > { %s2189_s16 = sadd.s32 4294967295, %s3064_s15   ;;  %p2193_p0 = scmp.ge.s32.totalorder %s3064_s15, 1  ;;  %s3064_s15 = sphi %s3091_s15, %s14_s15  }
   0x2   : > { %p162_p1 = scmp.lt.s32.totalorder %s3064_s15, 3 }
   0x4   : > { %p163_p2 = pnand %p2193_p0, %p162_p1 }
   0x5   : > { %v2962_v0 = vld [vmem:[%s3463_s1 + $0x40] sm:$0xff] (!%p163_p2)   ;;  %p188_p3 = scmp.lt.s32.totalorder (!%p163_p2), %s2189_s16, 1  ;;  %v2964_v2 = vld [vmem:[%s3463_s1 + $0x48] sm:$0xff] (!%p163_p2)   ;;  %v2966_v4 = vld [vmem:[%s3463_s1 + $0x50] sm:$0xff] (!%p163_p2)   ;;  %vm539_vm0 = vsmask.f32 (!%p163_p2), 3328 }
   0x6   : > { %166 = sbr.rel (%p163_p2) target bundleno = 393 (0x189), region = 36  ;;  %v2963_v1 = vld [vmem:[%s3463_s1 + $0x100] sm:$0xff] (!%p163_p2)   ;;  %2657 = vmatprep.subr.bf16.mxu1 (!%p163_p2), %v2962_v0  ;;  %v2965_v3 = vld [vmem:[%s3463_s1 + $0x108] sm:$0xff] (!%p163_p2)   ;;  %v2967_v5 = vld [vmem:[%s3463_s1 + $0x110] sm:$0xff] (!%p163_p2)   ;;  %vm540_vm1 = vsmask.f32 (!%p163_p2), 7440 }
   0x7   : > { %2753 = vmatprep.subr.bf16.mxu0 (!%p163_p2), %v2963_v1  ;;  %2658 = vmatpush3.bf16.msra.mxu1 (!%p163_p2), %v2962_v0  ;;  %v2968_v6 = vld [vmem:[%s3463_s1 + $0x58] sm:$0xff] (!%p163_p2)   ;;  %v2970_v8 = vld [vmem:[%s3463_s1 + $0x60] sm:$0xff] (!%p163_p2)   ;;  %v2972_v10 = vld [vmem:[%s3463_s1 + $0x68] sm:$0xff] (!%p163_p2)  }
   0x8   : > { %2754 = vmatpush3.bf16.msra.mxu0 (!%p163_p2), %v2963_v1  ;;  %2659 = vmatprep.subr.bf16.mxu1 (!%p163_p2), %v2964_v2  ;;  %v2969_v7 = vld [vmem:[%s3463_s1 + $0x118] sm:$0xff] (!%p163_p2)   ;;  %v2971_v9 = vld [vmem:[%s3463_s1 + $0x120] sm:$0xff] (!%p163_p2)   ;;  %v2973_v12 = vld [vmem:[%s3463_s1 + $0x128] sm:$0xff] (!%p163_p2)  }
   0x9   : > { %2755 = vmatprep.subr.bf16.mxu0 (!%p163_p2), %v2965_v3  ;;  %v2974_v14 = vld [vmem:[%s3463_s1 + $0x70] sm:$0xff] (!%p163_p2)   ;;  %v2976_v16 = vld [vmem:[%s3463_s1 + $0x78] sm:$0xff] (!%p163_p2)   ;;  %v2979_v18 = vld [vmem:[%s3463_s1] sm:$0xff] (!%p163_p2)  }
   0xa   : > { %v2975_v15 = vld [vmem:[%s3463_s1 + $0x130] sm:$0xff] (!%p163_p2)   ;;  %v2977_v17 = vld [vmem:[%s3463_s1 + $0x138] sm:$0xff] (!%p163_p2)   ;;  %v2981_v19 = vld [vmem:[%s3463_s1 + $0x140] sm:$0xff] (!%p163_p2)  }
   0xb   : > { %2660 = vmatpush3.bf16.msra.mxu1 (!%p163_p2), %v2964_v2  ;;  %v2984_v22 = vld [vmem:[%s3463_s1 + $0x8] sm:$0xff] (!%p163_p2)   ;;  %v2986_v26 = vld [vmem:[%s3463_s1 + $0x10] sm:$0xff] (!%p163_p2)   ;;  %v2988_v28 = vld [vmem:[%s3463_s1 + $0x18] sm:$0xff] (!%p163_p2)  }
   0xc   : > { %2756 = vmatpush3.bf16.msra.mxu0 (!%p163_p2), %v2965_v3  ;;  %2661 = vmatprep.subr.bf16.mxu1 (!%p163_p2), %v2966_v4  ;;  %v2985_v23 = vld [vmem:[%s3463_s1 + $0x148] sm:$0xff] (!%p163_p2)   ;;  %v2987_v27 = vld [vmem:[%s3463_s1 + $0x150] sm:$0xff] (!%p163_p2)   ;;  %v2989_v31 = vld [vmem:[%s3463_s1 + $0x158] sm:$0xff] (!%p163_p2)  }
   0xd   : > { %s3470_s16 = smov (!%p188_p3, %s2189_s16), 1  ;;  %2757 = vmatprep.subr.bf16.mxu0 %v2967_v5  ;;  %v2990_v38 = vld [vmem:[%s3463_s1 + $0x20] sm:$0xff]   ;;  %v2992_v47 = vld [vmem:[%s3463_s1 + $0x28] sm:$0xff]   ;;  %vm3206_vm2 = vmor %vm539_vm0, %vm540_vm1 }
   0xe   : > { %s2953_s7 = smul.u32 288, %s3470_s16  ;;  %v2991_v43 = vld [vmem:[%s3463_s1 + $0x160] sm:$0xff]   ;;  %v2993_v50 = vld [vmem:[%s3463_s1 + $0x168] sm:$0xff]   ;;  %v2995_v2 = vld [vmem:[%s3463_s1 + $0x30] sm:$0xff]   ;;  %s2517_s29 = sshll.u32 %s3470_s16, 5 }
   0xf   : > { %2662 = vmatpush3.bf16.msra.mxu1 %v2966_v4  ;;  %s197_s6 = scalar_lea.vmem %s3466_s4, %s2517_s29 }
  0x10   : > { %2758 = vmatpush3.bf16.msra.mxu0 %v2967_v5  ;;  %2663 = vmatprep.subr.bf16.mxu1 %v2968_v6  ;;  %s3135_s14 = scalar_lea.vmem %s3462_s0, %s2953_s7 }
  0x11   : > { %2759 = vmatprep.subr.bf16.mxu0 %v2969_v7  ;;  %v2978_v11 = vld [vmem:[%s3135_s14 + $0x48] ss:$8 sps:$4 sm:$0xff]   ;;  %v2980_v13 = vld [vmem:[%s3135_s14 + $0xd8] ss:$8 sps:$4 sm:$0xff]   ;;  %v2346_v34 = vld [vmem:[%s3135_s14 + $0x94] sm:$0x1] }
  0x12   : > { %2673 = vmatprep.mubr.bf16.mxu1 %v2978_v11  ;;  %2769 = vmatprep.mubr.bf16.mxu0 %v2980_v13  ;;  %v2982_v20 = vld [vmem:[%s3135_s14 + $0x58] ss:$8 sps:$4 sm:$0xff]   ;;  %v2983_v21 = vld [vmem:[%s3135_s14 + $0xe8] ss:$8 sps:$4 sm:$0xff]   ;;  %v2348_v39 = vld [vmem:[%s3135_s14 + $0x9c] sm:$0x1] }
  0x13   : > { %2664 = vmatpush3.bf16.msra.mxu1 %v2968_v6  ;;  %v2994_v24 = vld [vmem:[%s3135_s14 + $0x68] ss:$8 sps:$4 sm:$0xff]   ;;  %v2996_v25 = vld [vmem:[%s3135_s14 + $0xf8] ss:$8 sps:$4 sm:$0xff]   ;;  %v1176_v40 = vshll.u32 %v2346_v34, 16  ;;  %v1190_v46 = vshll.u32 %v2348_v39, 16 }
  0x14   : > { %2760 = vmatpush3.bf16.msra.mxu0 %v2969_v7  ;;  %2665 = vmatprep.subr.bf16.mxu1 %v2970_v8  ;;  %v2998_v29 = vld [vmem:[%s3135_s14 + $0x78] ss:$8 sps:$4 sm:$0xff]   ;;  %v2999_v30 = vld [vmem:[%s3135_s14 + $0x108] ss:$8 sps:$4 sm:$0xff]   ;;  %v2350_v57 = vld [vmem:[%s3135_s14 + $0xa4] sm:$0x1] }
  0x15   : > { %2761 = vmatprep.subr.bf16.mxu0 %v2971_v9  ;;  %v3002_v32 = vld [vmem:[%s3135_s14] ss:$8 sps:$4 sm:$0xff]   ;;  %v2345_v33 = vld [vmem:[%s3135_s14 + $0x90] sm:$0xf]  ;;  %v2347_v35 = vld [vmem:[%s3135_s14 + $0x98] sm:$0xf] }
  0x16   : > { %v1167_v36 = vshrl.u32 %v2345_v33, 16  ;;  %v1170_v37 = vshll.u32 %v2345_v33, 16  ;;  %v1181_v41 = vshrl.u32 %v2347_v35, 16  ;;  %v1184_v42 = vshll.u32 %v2347_v35, 16  ;;  %v2349_v56 = vld [vmem:[%s3135_s14 + $0xa0] sm:$0xf] }
  0x17   : > { %2666 = vmatpush3.bf16.msra.mxu1 %v2970_v8  ;;  %v1178_v52 = vrot.slane %v1176_v40, 5  ;;  %v1192_v55 = vrot.slane %v1190_v46, 5  ;;  %v2351_v59 = vld [vmem:[%s3135_s14 + $0xa8] sm:$0xf]  ;;  %v2352_v60 = vld [vmem:[%s3135_s14 + $0xac] sm:$0x1] }
  0x18   : > { %2762 = vmatpush3.bf16.msra.mxu0 %v2971_v9  ;;  %2667 = vmatprep.subr.bf16.mxu1 %v2972_v10  ;;  %v1169_v44 = vrot.slane %v1167_v36, 4  ;;  %v1172_v45 = vrot.slane %v1170_v37, 5  ;;  %v1183_v48 = vrot.slane %v1181_v41, 4  ;;  %v1186_v49 = vrot.slane %v1184_v42, 5  ;;  %v2997_v6 = vld [vmem:[%s3463_s1 + $0x170] sm:$0xff]  }
  0x19   : > { %2763 = vmatprep.subr.bf16.mxu0 %v2973_v12  ;;  %v1195_v61 = vshrl.u32 %v2349_v56, 16  ;;  %v1198_v63 = vshll.u32 %v2349_v56, 16  ;;  %v1204_v0 = vshll.u32 %v2350_v57, 16  ;;  %v1209_v1 = vshrl.u32 %v2351_v59, 16  ;;  %v3016_v37 = vld [vmem:[%s3135_s14 + $0x20] ss:$8 sps:$4 sm:$0xff]  }
  0x1a   : > { %v1173_v51 = vor.u32 %v1172_v45, %v1169_v44  ;;  %v1187_v54 = vor.u32 %v1186_v49, %v1183_v48  ;;  %v1212_v5 = vshll.u32 %v2351_v59, 16  ;;  %v3019_v48 = vld [vmem:[%s3135_s14 + $0x30] ss:$8 sps:$4 sm:$0xff]   ;;  %v2357_v49 = vld [vmem:[%s3135_s14 + $0xc0] sm:$0xf] }
  0x1b   : > { %2668 = vmatpush3.bf16.msra.mxu1 %v2972_v10  ;;  %v1197_v4 = vrot.slane %v1195_v61, 4  ;;  %v1200_v8 = vrot.slane %v1198_v63, 5  ;;  %v1211_v9 = vrot.slane %v1209_v1, 4  ;;  %v1218_v10 = vshll.u32 %v2352_v60, 16  ;;  %v3010_v59 = vld [vmem:[%s3463_s1 + $0x98] sm:$0xff]  }
  0x1c   : > { %2764 = vmatpush3.bf16.msra.mxu0 %v2973_v12  ;;  %2669 = vmatprep.subr.bf16.mxu1 %v2974_v14  ;;  %v1174_v58 = vrot.slane %v1173_v51, 4  ;;  %v1188_v62 = vrot.slane %v1187_v54, 4  ;;  %v1206_v12 = vrot.slane %v1204_v0, 5  ;;  %v1214_v13 = vrot.slane %v1212_v5, 5  ;;  %v2359_v51 = vld [vmem:[%s3135_s14 + $0xc8] sm:$0xf] }
  0x1d   : > { %2765 = vmatprep.subr.bf16.mxu0 %v2975_v15  ;;  %v1251_v56 = vshrl.u32 %v2357_v49, 16  ;;  %v1254_v57 = vshll.u32 %v2357_v49, 16  ;;  %v1265_v61 = vshrl.u32 %v2359_v51, 16 }
  0x1e   : > { %v1179_v3 = vsel %vm3206_vm2, %v1174_v58, %v1178_v52  ;;  %v1193_v7 = vsel %vm3206_vm2, %v1188_v62, %v1192_v55  ;;  %v3009_v52 = vld [vmem:[%s3463_s1 + $0x190] sm:$0xff]   ;;  %v2360_v55 = vld [vmem:[%s3135_s14 + $0xcc] sm:$0x1]  ;;  %v1268_v62 = vshll.u32 %v2359_v51, 16 }
  0x1f   : > { %2670 = vmatpush3.bf16.msra.mxu1 %v2974_v14  ;;  %v2377_v11 = vcombine.low %v1179_v3, %v1193_v7  ;;  %v3000_v14 = vld [vmem:[%s3463_s1 + $0x38] sm:$0xff]   ;;  %v1274_v63 = vshll.u32 %v2360_v55, 16  ;;  %v1253_v1 = vrot.slane %v1251_v56, 4 }
  0x20   : > { %2766 = vmatpush3.bf16.msra.mxu0 %v2975_v15  ;;  %2671 = vmatprep.subr.bf16.mxu1 %v2976_v16  ;;  %v1201_v15 = vor.u32 %v1200_v8, %v1197_v4  ;;  %v3011_v4 = vld [vmem:[%s3463_s1 + $0x198] sm:$0xff]   ;;  %v1270_v7 = vrot.slane %v1268_v62, 5 }
  0x21   : > { %2767 = vmatprep.subr.bf16.mxu0 %v2977_v17  ;;  %v1276_v8 = vrot.slane %v1274_v63, 5 }
  0x23   : > { %2672 = vmatpush3.bf16.msra.mxu1 %v2976_v16  ;;  %v1215_v16 = vor.u32 %v1214_v13, %v1211_v9  ;;  %v3012_v13 = vld [vmem:[%s3463_s1 + $0xa0] sm:$0xff]  }
  0x24   : > { %2768 = vmatpush3.bf16.msra.mxu0 %v2977_v17  ;;  %2681 = vmatprep.subr.bf16.mxu1 %v2979_v18  ;;  %v1202_v17 = vrot.slane %v1201_v15, 4 }
  0x25   : > { %2777 = vmatprep.subr.bf16.mxu0 %v2981_v19 }
  0x26   : > { %2674 = vmatmul.mubr.bf16.vlgmr.msra.gmra.mrb[0].mxu1 %v2982_v20  ;;  %v1216_v20 = vrot.slane %v1215_v16, 4  ;;  %v525_v16 = vld [vmem:[%s3135_s14 + $0x8] sm:$0xf] }
  0x27   : > { %2682 = vmatpush3.bf16.msra.mxu1 %v2979_v18  ;;  %2770 = vmatmul.mubr.bf16.vlgmr.msra.gmra.mrb[0].mxu0 %v2983_v21  ;;  %v1220_v18 = vrot.slane %v1218_v10, 5  ;;  %v3003_v21 = vld [vmem:[%s3463_s1 + $0x80] sm:$0xff]  }
  0x28   : > { %2778 = vmatpush3.bf16.msra.mxu0 %v2981_v19  ;;  %2683 = vmatprep.subr.bf16.mxu1 %v2984_v22  ;;  %v3001_v19 = vld [vmem:[%s3463_s1 + $0x178] sm:$0xff]  }
  0x29   : > { %2779 = vmatprep.subr.bf16.mxu0 %v2985_v23  ;;  %2677 = vmatprep.mubr.bf16.mxu1 %v2994_v24  ;;  %v3004_v24 = vld [vmem:[%s3463_s1 + $0x180] sm:$0xff]  }
  0x2a   : > { %2773 = vmatprep.mubr.bf16.mxu0 %v2996_v25  ;;  %v3005_v25 = vld [vmem:[%s3135_s14 + $0x10] ss:$8 sps:$4 sm:$0xff]  }
  0x2b   : > { %2684 = vmatpush3.bf16.msra.mxu1 %v2984_v22  ;;  %v1207_v22 = vsel %vm3206_vm2, %v1202_v17, %v1206_v12  ;;  %v524_v12 = vld [vmem:[%s3135_s14 + $0x4] sm:$0x1]  ;;  %v526_v17 = vld [vmem:[%s3135_s14 + $0xc] sm:$0x1] }
  0x2c   : > { %2780 = vmatpush3.bf16.msra.mxu0 %v2985_v23  ;;  %2685 = vmatprep.subr.bf16.mxu1 %v2986_v26  ;;  %v1221_v23 = vsel %vm3206_vm2, %v1216_v20, %v1220_v18 }
  0x2d   : > { %2781 = vmatprep.subr.bf16.mxu0 %v2987_v27 }
  0x2e   : > { %2678 = vmatmul.mubr.bf16.gmra.mrb[4].mxu1 %v2998_v29  ;;  %v3007_v29 = vld [vmem:[%s3463_s1 + $0x188] sm:$0xff]  }
  0x2f   : > { %2686 = vmatpush3.bf16.msra.mxu1 %v2986_v26  ;;  %2774 = vmatmul.mubr.bf16.gmra.mrb[4].mxu0 %v2999_v30  ;;  %v3006_v26 = vld [vmem:[%s3463_s1 + $0x88] sm:$0xff]   ;;  %v2354_v30 = vld [vmem:[%s3135_s14 + $0xb4] sm:$0x1] }
  0x30   : > { %2782 = vmatpush3.bf16.msra.mxu0 %v2987_v27  ;;  %2687 = vmatprep.subr.bf16.mxu1 %v2988_v28  ;;  %v2353_v27 = vld [vmem:[%s3135_s14 + $0xb0] sm:$0xf]  ;;  %v1232_v35 = vshll.u32 %v2354_v30, 16 }
  0x31   : > { %2783 = vmatprep.subr.bf16.mxu0 %v2989_v31  ;;  %2697 = vmatprep.mubr.bf16.mxu1 %v3002_v32  ;;  %v2356_v32 = vld [vmem:[%s3135_s14 + $0xbc] sm:$0x1]  ;;  %v1223_v33 = vshrl.u32 %v2353_v27, 16  ;;  %v1226_v34 = vshll.u32 %v2353_v27, 16  ;;  %v566_v27 = vshll.u32 %v526_v17, 16 }
  0x32   : > { %2793 = vmatprep.mubr.bf16.mxu0 %v2377_v11  ;;  %v1246_v39 = vshll.u32 %v2356_v32, 16  ;;  %v1234_v44 = vrot.slane %v1232_v35, 5  ;;  %v523_v11 = vld [vmem:[%s3135_s14] sm:$0xf]  ;;  %v3014_v32 = vld [vmem:[%s3463_s1 + $0xa8] sm:$0xff]  }
  0x33   : > { %2688 = vmatpush3.bf16.msra.mxu1 %v2988_v28  ;;  %v2378_v28 = vcombine.low %v1207_v22, %v1221_v23  ;;  %v1225_v40 = vrot.slane %v1223_v33, 4  ;;  %v1228_v41 = vrot.slane %v1226_v34, 5  ;;  %v543_v18 = vshrl.u32 %v523_v11, 16  ;;  %v534_v17 = vld [vmem:[%s3135_s14 + $0x2c] sm:$0x1] }
  0x34   : > { %2784 = vmatpush3.bf16.msra.mxu0 %v2989_v31  ;;  %2689 = vmatprep.subr.bf16.mxu1 %v2990_v38  ;;  %v2355_v31 = vld [vmem:[%s3135_s14 + $0xb8] sm:$0xf]  ;;  %v1248_v46 = vrot.slane %v1246_v39, 5  ;;  %v557_v22 = vshrl.u32 %v525_v16, 16  ;;  %v560_v23 = vshll.u32 %v525_v16, 16 }
  0x35   : > { %2785 = vmatprep.subr.bf16.mxu0 %v2991_v43  ;;  %v1237_v36 = vshrl.u32 %v2355_v31, 16  ;;  %v533_v16 = vld [vmem:[%s3135_s14 + $0x28] sm:$0xf] }
  0x36   : > { %v559_v30 = vrot.slane %v557_v22, 4  ;;  %v613_v22 = vshrl.u32 %v533_v16, 16 }
  0x37   : > { %2690 = vmatpush3.bf16.msra.mxu1 %v2990_v38  ;;  %v1240_v38 = vshll.u32 %v2355_v31, 16  ;;  %v1239_v42 = vrot.slane %v1237_v36, 4  ;;  %v562_v31 = vrot.slane %v560_v23, 5  ;;  %v568_v36 = vrot.slane %v566_v27, 5 }
  0x38   : > { %2786 = vmatpush3.bf16.msra.mxu0 %v2991_v43  ;;  %2691 = vmatprep.subr.bf16.mxu1 %v2992_v47  ;;  %v3008_v43 = vld [vmem:[%s3463_s1 + $0x90] sm:$0xff]   ;;  %v616_v23 = vshll.u32 %v533_v16, 16  ;;  %v2462_v16 = vld [vmem:[%s3135_s14 + $0xc] sm:$0x1] }
  0x39   : > { %2787 = vmatprep.subr.bf16.mxu0 %v2993_v50  ;;  %v1242_v45 = vrot.slane %v1240_v38, 5  ;;  %v3015_v38 = vld [vmem:[%s3463_s1 + $0x1a8] sm:$0xff]  }
  0x3b   : > { %2692 = vmatpush3.bf16.msra.mxu1 %v2992_v47  ;;  %v1229_v47 = vor.u32 %v1228_v41, %v1225_v40  ;;  %v1243_v54 = vor.u32 %v1242_v45, %v1239_v42  ;;  %v563_v40 = vor.u32 %v562_v31, %v559_v30  ;;  %v527_v41 = vld [vmem:[%s3135_s14 + $0x10] sm:$0xf]  ;;  %v618_v31 = vrot.slane %v616_v23, 5 }
  0x3c   : > { %2788 = vmatpush3.bf16.msra.mxu0 %v2993_v50  ;;  %2693 = vmatprep.subr.bf16.mxu1 %v2995_v2  ;;  %v2358_v50 = vld [vmem:[%s3135_s14 + $0xc4] sm:$0x1]  ;;  %v571_v45 = vshrl.u32 %v527_v41, 16  ;;  %v535_v30 = vld [vmem:[%s3135_s14 + $0x30] sm:$0xf] }
  0x3d   : > { %2789 = vmatprep.subr.bf16.mxu0 %v2997_v6  ;;  %v1260_v58 = vshll.u32 %v2358_v50, 16  ;;  %v1230_v60 = vrot.slane %v1229_v47, 4  ;;  %v1244_v0 = vrot.slane %v1243_v54, 4  ;;  %v530_v47 = vld [vmem:[%s3135_s14 + $0x1c] sm:$0x1] }
  0x3f   : > { %2694 = vmatpush3.bf16.msra.mxu1 %v2995_v2  ;;  %v1256_v2 = vrot.slane %v1254_v57, 5  ;;  %v1262_v3 = vrot.slane %v1260_v58, 5  ;;  %v1235_v5 = vsel %vm3206_vm2, %v1230_v60, %v1234_v44  ;;  %v1249_v9 = vsel %vm3206_vm2, %v1244_v0, %v1248_v46  ;;  %v529_v44 = vld [vmem:[%s3135_s14 + $0x18] sm:$0xf]  ;;  %v3018_v60 = vld [vmem:[%s3463_s1 + $0x1b0] sm:$0xff]  }
  0x40   : > { %2790 = vmatpush3.bf16.msra.mxu0 %v2997_v6  ;;  %2695 = vmatprep.subr.bf16.mxu1 %v3000_v14  ;;  %v1267_v6 = vrot.slane %v1265_v61, 4  ;;  %v564_v46 = vrot.slane %v563_v40, 4  ;;  %v585_v50 = vshrl.u32 %v529_v44, 16  ;;  %v588_v54 = vshll.u32 %v529_v44, 16 }
  0x41   : > { %2791 = vmatprep.subr.bf16.mxu0 %v3001_v19  ;;  %v1257_v10 = vor.u32 %v1256_v2, %v1253_v1  ;;  %v594_v58 = vshll.u32 %v530_v47, 16 }
  0x42   : > { %v1271_v15 = vor.u32 %v1270_v7, %v1267_v6  ;;  %v569_v55 = vsel %vm3206_vm2, %v564_v46, %v568_v36  ;;  %v587_v57 = vrot.slane %v585_v50, 4  ;;  %v590_v63 = vrot.slane %v588_v54, 5  ;;  %v3021_v6 = vld [vmem:[%s3463_s1 + $0x1b8] sm:$0xff]   ;;  %v3022_v7 = vld [vmem:[%s3463_s1 + $0xc0] sm:$0xff]  }
  0x43   : > { %2696 = vmatpush3.bf16.msra.mxu1 %v3000_v14  ;;  %v2379_v14 = vcombine.low %v1235_v5, %v1249_v9  ;;  %v1258_v20 = vrot.slane %v1257_v10, 4  ;;  %v3024_v10 = vld [vmem:[%s3463_s1 + $0x1c0] sm:$0xff]   ;;  %v3030_v50 = vld [vmem:[%s3463_s1 + $0xd8] sm:$0xff]  }
  0x44   : > { %2792 = vmatpush3.bf16.msra.mxu0 %v3001_v19  ;;  %2705 = vmatprep.subr.bf16.mxu1 %v3003_v21  ;;  %v546_v19 = vshll.u32 %v523_v11, 16  ;;  %v591_v1 = vor.u32 %v590_v63, %v587_v57  ;;  %v3025_v11 = vld [vmem:[%s3135_s14 + $0x18] ss:$8 sps:$4 sm:$0xff]  }
  0x45   : > { %2801 = vmatprep.subr.bf16.mxu0 %v3004_v24 }
  0x46   : > { %2698 = vmatmul.mubr.bf16.vlgmr.msra.gmra.mrb[0].mxu1 %v3005_v25  ;;  %v545_v25 = vrot.slane %v543_v18, 4  ;;  %v592_v5 = vrot.slane %v591_v1, 4  ;;  %v3027_v18 = vld [vmem:[%s3463_s1 + $0x1c8] sm:$0xff]   ;;  %v3032_v1 = vld [vmem:[%s3463_s1 + $0xe0] sm:$0xff]  }
  0x47   : > { %2706 = vmatpush3.bf16.msra.mxu1 %v3003_v21  ;;  %2794 = vmatmul.mubr.bf16.vlgmr.msra.gmra.mrb[0].mxu0 %v2378_v28  ;;  %v552_v21 = vshll.u32 %v524_v12, 16  ;;  %v3013_v28 = vld [vmem:[%s3463_s1 + $0x1a0] sm:$0xff]  }
  0x48   : > { %2802 = vmatpush3.bf16.msra.mxu0 %v3004_v24  ;;  %2707 = vmatprep.subr.bf16.mxu1 %v3006_v26  ;;  %v1272_v24 = vrot.slane %v1271_v15, 4  ;;  %v531_v12 = vld [vmem:[%s3135_s14 + $0x20] sm:$0xf]  ;;  %v532_v15 = vld [vmem:[%s3135_s14 + $0x24] sm:$0x1] }
  0x49   : > { %2803 = vmatprep.subr.bf16.mxu0 %v3007_v29  ;;  %2701 = vmatprep.mubr.bf16.mxu1 %v3016_v37  ;;  %v554_v35 = vrot.slane %v552_v21, 5  ;;  %v3023_v37 = vld [vmem:[%s3135_s14 + $0x8] ss:$8 sps:$4 sm:$0xff]   ;;  %v608_v21 = vshll.u32 %v532_v15, 16 }
  0x4a   : > { %2797 = vmatprep.mubr.bf16.mxu0 %v2379_v14  ;;  %v1277_v33 = vsel %vm3206_vm2, %v1272_v24, %v1276_v8  ;;  %v3026_v14 = vld [vmem:[%s3463_s1 + $0xc8] sm:$0xff]   ;;  %v622_v24 = vshll.u32 %v534_v17, 16  ;;  %v2463_v17 = vld [vmem:[%s3135_s14 + $0x10] sm:$0xf] }
  0x4b   : > { %2708 = vmatpush3.bf16.msra.mxu1 %v3006_v26  ;;  %v548_v26 = vrot.slane %v546_v19, 5  ;;  %v599_v19 = vshrl.u32 %v531_v12, 16  ;;  %v2461_v15 = vld [vmem:[%s3135_s14 + $0x8] sm:$0xf]  ;;  %v1808_v23 = vshll.u32 %v2463_v17, 16 }
  0x4c   : > { %2804 = vmatpush3.bf16.msra.mxu0 %v3007_v29  ;;  %2709 = vmatprep.subr.bf16.mxu1 %v3008_v43  ;;  %v1263_v29 = vsel %vm3206_vm2, %v1258_v20, %v1262_v3  ;;  %v596_v3 = vrot.slane %v594_v58, 5  ;;  %v602_v20 = vshll.u32 %v531_v12, 16  ;;  %v3038_v58 = vld [vmem:[%s3135_s14 + $0x38] ss:$8 sps:$4 sm:$0xff]  }
  0x4d   : > { %2805 = vmatprep.subr.bf16.mxu0 %v3009_v52  ;;  %v549_v34 = vor.u32 %v548_v26, %v545_v25  ;;  %v2380_v39 = vcombine.low %v1263_v29, %v1277_v33  ;;  %v3036_v25 = vld [vmem:[%s3135_s14 + $0x28] ss:$8 sps:$4 sm:$0xff]   ;;  %v601_v26 = vrot.slane %v599_v19, 4  ;;  %v615_v29 = vrot.slane %v613_v22, 4  ;;  %v536_v33 = vld [vmem:[%s3135_s14 + $0x34] sm:$0x1] }
  0x4e   : > { %2702 = vmatmul.mubr.bf16.gmra.mrb[4].mxu1 %v3019_v48  ;;  %v574_v48 = vshll.u32 %v527_v41, 16  ;;  %v597_v9 = vsel %vm3206_vm2, %v592_v5, %v596_v3  ;;  %v604_v27 = vrot.slane %v602_v20, 5  ;;  %v636_v40 = vshll.u32 %v536_v33, 16  ;;  %v3029_v41 = vld [vmem:[%s3463_s1 + $0x1d0] sm:$0xff]   ;;  %v3033_v5 = vld [vmem:[%s3463_s1 + $0x1e0] sm:$0xff]   ;;  %v3040_v12 = vld [vmem:[%s3463_s1 + $0xf8] sm:$0xff]  }
  0x4f   : > { %2710 = vmatpush3.bf16.msra.mxu1 %v3008_v43  ;;  %v550_v42 = vrot.slane %v549_v34, 4  ;;  %v528_v43 = vld [vmem:[%s3135_s14 + $0x14] sm:$0x1]  ;;  %2798 = vmatmul.mubr.bf16.gmra.mrb[4].mxu0 %v2380_v39  ;;  %v537_v34 = vld [vmem:[%s3135_s14 + $0x38] sm:$0xf]  ;;  %v630_v39 = vshll.u32 %v535_v30, 16 }
  0x50   : > { %2806 = vmatpush3.bf16.msra.mxu0 %v3009_v52  ;;  %2711 = vmatprep.subr.bf16.mxu1 %v3010_v59  ;;  %v580_v49 = vshll.u32 %v528_v43, 16  ;;  %v573_v52 = vrot.slane %v571_v45, 4  ;;  %v576_v56 = vrot.slane %v574_v48, 5  ;;  %v605_v36 = vor.u32 %v604_v27, %v601_v26  ;;  %v2472_v33 = vld [vmem:[%s3135_s14 + $0x34] sm:$0x1] }
  0x51   : > { %2807 = vmatprep.subr.bf16.mxu0 %v3011_v4  ;;  %v555_v51 = vsel %vm3206_vm2, %v550_v42, %v554_v35  ;;  %2817 = vmatprep.mubr.bf16.mxu0 %v3023_v37  ;;  %v3028_v35 = vld [vmem:[%s3463_s1 + $0xd0] sm:$0xff]   ;;  %v538_v37 = vld [vmem:[%s3135_s14 + $0x3c] sm:$0x1]  ;;  %v619_v42 = vor.u32 %v618_v31, %v615_v29  ;;  %v641_v43 = vshrl.u32 %v537_v34, 16  ;;  %v644_v44 = vshll.u32 %v537_v34, 16 }
  0x52   : > { %v2261_v61 = vcombine.low %v555_v51, %v569_v55  ;;  %v582_v62 = vrot.slane %v580_v49, 5  ;;  %v577_v0 = vor.u32 %v576_v56, %v573_v52  ;;  %v650_v45 = vshll.u32 %v538_v37, 16  ;;  %v2471_v29 = vld [vmem:[%s3135_s14 + $0x30] sm:$0xf]  ;;  %v3045_v34 = vld [vmem:[%s3135_s14 + $0x60] ss:$8 sps:$4 sm:$0xff]  }
  0x53   : > { %2712 = vmatpush3.bf16.msra.mxu1 %v3010_v59  ;;  %v3017_v59 = vld [vmem:[%s3463_s1 + $0xb0] sm:$0xff]   ;;  %v606_v46 = vrot.slane %v605_v36, 4  ;;  %v632_v48 = vrot.slane %v630_v39, 5  ;;  %v638_v49 = vrot.slane %v636_v40, 5  ;;  %v620_v51 = vrot.slane %v619_v42, 4  ;;  %v3047_v39 = vld [vmem:[%s3463_s1 + $0x208] sm:$0xff]  }
  0x54   : > { %2808 = vmatpush3.bf16.msra.mxu0 %v3011_v4  ;;  %2713 = vmatprep.subr.bf16.mxu1 %v3012_v13  ;;  %v578_v2 = vrot.slane %v577_v0, 4  ;;  %v3020_v4 = vld [vmem:[%s3463_s1 + $0xb8] sm:$0xff]   ;;  %v643_v52 = vrot.slane %v641_v43, 4  ;;  %v646_v54 = vrot.slane %v644_v44, 5  ;;  %v652_v55 = vrot.slane %v650_v45, 5 }
  0x55   : > { %2809 = vmatprep.subr.bf16.mxu0 %v3013_v28  ;;  %2721 = vmatprep.mubr.bf16.mxu1 %v2261_v61  ;;  %v3031_v61 = vld [vmem:[%s3463_s1 + $0x1d8] sm:$0xff]   ;;  %v1791_v19 = vshrl.u32 %v2461_v15, 16  ;;  %v1794_v20 = vshll.u32 %v2461_v15, 16  ;;  %v1805_v22 = vshrl.u32 %v2463_v17, 16  ;;  %v1864_v42 = vshll.u32 %v2471_v29, 16  ;;  %v3054_v15 = vld [vmem:[%s3463_s1 + $0x220] sm:$0xff]  }
  0x56   : > { %v583_v8 = vsel %vm3206_vm2, %v578_v2, %v582_v62  ;;  %v1870_v43 = vshll.u32 %v2472_v33, 16  ;;  %v3048_v44 = vld [vmem:[%s3135_s14 + $0xb0] ss:$8 sps:$4 sm:$0xff]  }
  0x57   : > { %2714 = vmatpush3.bf16.msra.mxu1 %v3012_v13  ;;  %v2262_v13 = vcombine.low %v583_v8, %v597_v9  ;;  %v3034_v8 = vld [vmem:[%s3463_s1 + $0xe8] sm:$0xff]   ;;  %v1793_v26 = vrot.slane %v1791_v19, 4  ;;  %v1796_v27 = vrot.slane %v1794_v20, 5  ;;  %v1807_v31 = vrot.slane %v1805_v22, 4 }
  0x58   : > { %2810 = vmatpush3.bf16.msra.mxu0 %v3013_v28  ;;  %2715 = vmatprep.subr.bf16.mxu1 %v3014_v32  ;;  %v610_v28 = vrot.slane %v608_v21, 5  ;;  %v3035_v9 = vld [vmem:[%s3463_s1 + $0x1e8] sm:$0xff]   ;;  %v1800_v21 = vshll.u32 %v2462_v16, 16 }
  0x59   : > { %2811 = vmatprep.subr.bf16.mxu0 %v3015_v38  ;;  %v3055_v20 = vld [vmem:[%s3463_s1 + $0x228] sm:$0xff]  }
  0x5a   : > { %v611_v56 = vsel %vm3206_vm2, %v606_v46, %v610_v28  ;;  %v2470_v28 = vld [vmem:[%s3135_s14 + $0x2c] sm:$0x1]  ;;  %v1802_v45 = vrot.slane %v1800_v21, 5  ;;  %v2474_v21 = vld [vmem:[%s3135_s14 + $0x3c] sm:$0x1] }
  0x5b   : > { %2716 = vmatpush3.bf16.msra.mxu1 %v3014_v32  ;;  %v624_v32 = vrot.slane %v622_v24, 5 }
  0x5c   : > { %2812 = vmatpush3.bf16.msra.mxu0 %v3015_v38  ;;  %2717 = vmatprep.subr.bf16.mxu1 %v3017_v59  ;;  %v627_v38 = vshrl.u32 %v535_v30, 16  ;;  %v3044_v30 = vld [vmem:[%s3135_s14 + $0xa0] ss:$8 sps:$4 sm:$0xff]  }
  0x5d   : > { %2813 = vmatprep.subr.bf16.mxu0 %v3018_v60 }
  0x5e   : > { %v629_v47 = vrot.slane %v627_v38, 4  ;;  %v1856_v38 = vshll.u32 %v2470_v28, 16 }
  0x5f   : > { %2718 = vmatpush3.bf16.msra.mxu1 %v3017_v59  ;;  %v625_v59 = vsel %vm3206_vm2, %v620_v51, %v624_v32  ;;  %v1810_v32 = vrot.slane %v1808_v23, 5 }
  0x60   : > { %2814 = vmatpush3.bf16.msra.mxu0 %v3018_v60  ;;  %2719 = vmatprep.subr.bf16.mxu1 %v3020_v4  ;;  %v633_v57 = vor.u32 %v632_v48, %v629_v47  ;;  %v647_v60 = vor.u32 %v646_v54, %v643_v52  ;;  %v2263_v62 = vcombine.low %v611_v56, %v625_v59  ;;  %v1866_v54 = vrot.slane %v1864_v42, 5 }
  0x61   : > { %2815 = vmatprep.subr.bf16.mxu0 %v3021_v6  ;;  %v1811_v40 = vor.u32 %v1810_v32, %v1807_v31  ;;  %v1858_v56 = vrot.slane %v1856_v38, 5  ;;  %v1872_v59 = vrot.slane %v1870_v43, 5  ;;  %v2466_v31 = vld [vmem:[%s3135_s14 + $0x1c] sm:$0x1]  ;;  %v2468_v32 = vld [vmem:[%s3135_s14 + $0x24] sm:$0x1] }
  0x62   : > { %v634_v63 = vrot.slane %v633_v57, 4  ;;  %v648_v0 = vrot.slane %v647_v60, 4  ;;  %v3052_v57 = vld [vmem:[%s3463_s1 + $0x210] sm:$0xff]  }
  0x63   : > { %2720 = vmatpush3.bf16.msra.mxu1 %v3020_v4  ;;  %v3043_v4 = vld [vmem:[%s3135_s14 + $0x50] ss:$8 sps:$4 sm:$0xff]   ;;  %v1812_v51 = vrot.slane %v1811_v40, 4 }
  0x64   : > { %2816 = vmatpush3.bf16.msra.mxu0 %v3021_v6  ;;  %2729 = vmatprep.subr.bf16.mxu1 %v3022_v7  ;;  %v639_v2 = vsel %vm3206_vm2, %v634_v63, %v638_v49  ;;  %v653_v3 = vsel %vm3206_vm2, %v648_v0, %v652_v55  ;;  %v3049_v49 = vld [vmem:[%s3135_s14 + $0x70] ss:$8 sps:$4 sm:$0xff]  }
  0x65   : > { %2825 = vmatprep.subr.bf16.mxu0 %v3024_v10  ;;  %v2264_v6 = vcombine.low %v639_v2, %v653_v3  ;;  %v3053_v3 = vld [vmem:[%s3463_s1 + $0x218] sm:$0xff]  }
  0x66   : > { %2722 = vmatmul.mubr.bf16.vlgmr.msra.gmra.mrb[0].mxu1 %v2262_v13  ;;  %v3041_v13 = vld [vmem:[%s3463_s1 + $0x1f8] sm:$0xff]  }
  0x67   : > { %2730 = vmatpush3.bf16.msra.mxu1 %v3022_v7  ;;  %2818 = vmatmul.mubr.bf16.vlgmr.msra.gmra.mrb[0].mxu0 %v3025_v11  ;;  %v3042_v7 = vld [vmem:[%s3135_s14 + $0x90] ss:$8 sps:$4 sm:$0xff]  }
  0x68   : > { %2826 = vmatpush3.bf16.msra.mxu0 %v3024_v10  ;;  %2731 = vmatprep.subr.bf16.mxu1 %v3026_v14  ;;  %v3037_v10 = vld [vmem:[%s3463_s1 + $0xf0] sm:$0xff]  }
  0x69   : > { %2827 = vmatprep.subr.bf16.mxu0 %v3027_v18  ;;  %2821 = vmatprep.mubr.bf16.mxu0 %v3036_v25  ;;  %v3039_v11 = vld [vmem:[%s3463_s1 + $0x1f0] sm:$0xff]   ;;  %v2469_v25 = vld [vmem:[%s3135_s14 + $0x28] sm:$0xf] }
  0x6a   : > { %2725 = vmatprep.mubr.bf16.mxu1 %v2263_v62  ;;  %v1847_v36 = vshrl.u32 %v2469_v25, 16  ;;  %v1850_v37 = vshll.u32 %v2469_v25, 16 }
  0x6b   : > { %2732 = vmatpush3.bf16.msra.mxu1 %v3026_v14  ;;  %v3046_v14 = vld [vmem:[%s3463_s1 + $0x200] sm:$0xff]  }
  0x6c   : > { %2828 = vmatpush3.bf16.msra.mxu0 %v3027_v18  ;;  %2733 = vmatprep.subr.bf16.mxu1 %v3028_v35  ;;  %v2464_v18 = vld [vmem:[%s3135_s14 + $0x14] sm:$0x1]  ;;  %v1849_v47 = vrot.slane %v1847_v36, 4  ;;  %v1852_v48 = vrot.slane %v1850_v37, 5 }
  0x6d   : > { %2829 = vmatprep.subr.bf16.mxu0 %v3029_v41  ;;  %v1814_v24 = vshll.u32 %v2464_v18, 16  ;;  %v3056_v37 = vld [vmem:[%s3463_s1 + $0x230] sm:$0xff]  }
  0x6e   : > { %2726 = vmatmul.mubr.bf16.gmra.mrb[4].mxu1 %v2264_v6  ;;  %v1853_v55 = vor.u32 %v1852_v48, %v1849_v47  ;;  %v2475_v6 = vld [vmem:[%s3135_s14 + $0x40] sm:$0xf] }
  0x6f   : > { %2734 = vmatpush3.bf16.msra.mxu1 %v3028_v35  ;;  %2822 = vmatmul.mubr.bf16.gmra.mrb[4].mxu0 %v3038_v58  ;;  %v1797_v35 = vor.u32 %v1796_v27, %v1793_v26  ;;  %v1816_v46 = vrot.slane %v1814_v24, 5 }
  0x70   : > { %2830 = vmatpush3.bf16.msra.mxu0 %v3029_v41  ;;  %2735 = vmatprep.subr.bf16.mxu1 %v3030_v50  ;;  %v1861_v41 = vshrl.u32 %v2471_v29, 16  ;;  %v1854_v60 = vrot.slane %v1853_v55, 4 }
  0x71   : > { %2831 = vmatprep.subr.bf16.mxu0 %v3031_v61  ;;  %2841 = vmatprep.mubr.bf16.mxu0 %v3043_v4  ;;  %v1817_v63 = vsel %vm3206_vm2, %v1812_v51, %v1816_v46  ;;  %v3057_v46 = vld [vmem:[%s3463_s1 + $0x238] sm:$0xff]  }
  0x72   : > { %2745 = vmatprep.mubr.bf16.mxu1 %v3042_v7  ;;  %v1863_v52 = vrot.slane %v1861_v41, 4  ;;  %v1859_v2 = vsel %vm3206_vm2, %v1854_v60, %v1858_v56  ;;  %v1842_v41 = vshll.u32 %v2468_v32, 16 }
  0x73   : > { %2736 = vmatpush3.bf16.msra.mxu1 %v3030_v50  ;;  %v1798_v50 = vrot.slane %v1797_v35, 4 }
  0x74   : > { %2832 = vmatpush3.bf16.msra.mxu0 %v3031_v61  ;;  %2737 = vmatprep.subr.bf16.mxu1 %v3032_v1  ;;  %v1867_v58 = vor.u32 %v1866_v54, %v1863_v52  ;;  %v3050_v61 = vld [vmem:[%s3135_s14 + $0xc0] ss:$8 sps:$4 sm:$0xff]  }
  0x75   : > { %2833 = vmatprep.subr.bf16.mxu0 %v3033_v5  ;;  %v1803_v62 = vsel %vm3206_vm2, %v1798_v50, %v1802_v45  ;;  %v1844_v50 = vrot.slane %v1842_v41, 5 }
  0x76   : > { %v1868_v0 = vrot.slane %v1867_v58, 4  ;;  %v2493_v7 = vcombine.low %v1803_v62, %v1817_v63 }
  0x77   : > { %2738 = vmatpush3.bf16.msra.mxu1 %v3032_v1  ;;  %v3051_v1 = vld [vmem:[%s3135_s14 + $0x80] ss:$8 sps:$4 sm:$0xff]  }
  0x78   : > { %2834 = vmatpush3.bf16.msra.mxu0 %v3033_v5  ;;  %2739 = vmatprep.subr.bf16.mxu1 %v3034_v8  ;;  %v1873_v4 = vsel %vm3206_vm2, %v1868_v0, %v1872_v59  ;;  %v2473_v5 = vld [vmem:[%s3135_s14 + $0x38] sm:$0xf] }
  0x79   : > { %2835 = vmatprep.subr.bf16.mxu0 %v3035_v9 }
  0x7b   : > { %2740 = vmatpush3.bf16.msra.mxu1 %v3034_v8  ;;  %v2465_v8 = vld [vmem:[%s3135_s14 + $0x18] sm:$0xf] }
  0x7c   : > { %2836 = vmatpush3.bf16.msra.mxu0 %v3035_v9  ;;  %2741 = vmatprep.subr.bf16.mxu1 %v3037_v10  ;;  %v2467_v9 = vld [vmem:[%s3135_s14 + $0x20] sm:$0xf]  ;;  %v1819_v16 = vshrl.u32 %v2465_v8, 16  ;;  %v1822_v17 = vshll.u32 %v2465_v8, 16 }
  0x7d   : > { %2837 = vmatprep.subr.bf16.mxu0 %v3039_v11  ;;  %v1833_v18 = vshrl.u32 %v2467_v9, 16  ;;  %v1836_v19 = vshll.u32 %v2467_v9, 16  ;;  %v2505_v9 = vld [vmem:[%s3464_s2] ss:$0 sm:$0xff] }
  0x7e   : > { %v1821_v26 = vrot.slane %v1819_v16, 4  ;;  %v1824_v27 = vrot.slane %v1822_v17, 5 }
  0x7f   : > { %2742 = vmatpush3.bf16.msra.mxu1 %v3037_v10  ;;  %v2495_v10 = vcombine.low %v1859_v2, %v1873_v4  ;;  %v1835_v28 = vrot.slane %v1833_v18, 4  ;;  %v1838_v29 = vrot.slane %v1836_v19, 5 }
  0x80   : > { %2838 = vmatpush3.bf16.msra.mxu0 %v3039_v11  ;;  %2743 = vmatprep.subr.bf16.mxu1 %v3040_v12  ;;  %v1875_v11 = vshrl.u32 %v2473_v5, 16  ;;  %v1825_v38 = vor.u32 %v1824_v27, %v1821_v26 }
  0x81   : > { %2839 = vmatprep.subr.bf16.mxu0 %v3041_v13  ;;  %v1839_v40 = vor.u32 %v1838_v29, %v1835_v28 }
  0x82   : > { %v1877_v22 = vrot.slane %v1875_v11, 4  ;;  %v1826_v47 = vrot.slane %v1825_v38, 4 }
  0x83   : > { %2744 = vmatpush3.bf16.msra.mxu1 %v3040_v12  ;;  %v1878_v12 = vshll.u32 %v2473_v5, 16 }
  0x84   : > { %2840 = vmatpush3.bf16.msra.mxu0 %v3041_v13  ;;  %2873 = vmatprep.subr.bf16.mxu1 %v3046_v14  ;;  %v1889_v13 = vshrl.u32 %v2475_v6, 16 }
  0x85   : > { %2849 = vmatprep.subr.bf16.mxu0 %v3046_v14  ;;  %v1880_v23 = vrot.slane %v1878_v12, 5 }
  0x86   : > { %2746 = vmatmul.mubr.bf16.vlgmr.msra.gmra.mrb[0].mxu1 %v3044_v30  ;;  %v1891_v24 = vrot.slane %v1889_v13, 4  ;;  %v2476_v30 = vld [vmem:[%s3135_s14 + $0x44] sm:$0x1] }
  0x87   : > { %2842 = vmatmul.mubr.bf16.vlgmr.msra.gmra.mrb[0].mxu0 %v3045_v34  ;;  %2881 = vmatpush3.bf16.msra.mxu1 %v3046_v14  ;;  %v1881_v33 = vor.u32 %v1880_v23, %v1877_v22  ;;  %v1884_v34 = vshll.u32 %v2474_v21, 16  ;;  %v1898_v36 = vshll.u32 %v2476_v30, 16 }
  0x88   : > { %2850 = vmatpush3.bf16.msra.mxu0 %v3046_v14  ;;  %2874 = vmatprep.subr.bf16.mxu1 %v3047_v39  ;;  %v1892_v14 = vshll.u32 %v2475_v6, 16 }
  0x89   : > { %2851 = vmatprep.subr.bf16.mxu0 %v3047_v39  ;;  %2749 = vmatprep.mubr.bf16.mxu1 %v3048_v44  ;;  %v1882_v42 = vrot.slane %v1881_v33, 4  ;;  %v1886_v43 = vrot.slane %v1884_v34, 5  ;;  %v1900_v45 = vrot.slane %v1898_v36, 5 }
  0x8a   : > { %2845 = vmatprep.mubr.bf16.mxu0 %v3049_v49  ;;  %v1894_v25 = vrot.slane %v1892_v14, 5  ;;  %v1840_v49 = vrot.slane %v1839_v40, 4 }
  0x8b   : > { %2882 = vmatpush3.bf16.msra.mxu1 %v3047_v39  ;;  %v1887_v51 = vsel %vm3206_vm2, %v1882_v42, %v1886_v43 }
  0x8c   : > { %2852 = vmatpush3.bf16.msra.mxu0 %v3047_v39  ;;  %2875 = vmatprep.subr.bf16.mxu1 %v3052_v57  ;;  %v1895_v35 = vor.u32 %v1894_v25, %v1891_v24  ;;  %v1828_v39 = vshll.u32 %v2466_v31, 16  ;;  %v1845_v55 = vsel %vm3206_vm2, %v1840_v49, %v1844_v50 }
  0x8d   : > { %2853 = vmatprep.subr.bf16.mxu0 %v3052_v57 }
  0x8e   : > { %2750 = vmatmul.mubr.bf16.gmra.mrb[4].mxu1 %v3050_v61  ;;  %v1896_v44 = vrot.slane %v1895_v35, 4  ;;  %v1830_v48 = vrot.slane %v1828_v39, 5 }
  0x8f   : > { %2846 = vmatmul.mubr.bf16.gmra.mrb[4].mxu0 %v3051_v1  ;;  %2883 = vmatpush3.bf16.msra.mxu1 %v3052_v57 }
  0x90   : > { %2854 = vmatpush3.bf16.msra.mxu0 %v3052_v57  ;;  %2876 = vmatprep.subr.bf16.mxu1 %v3053_v3  ;;  %v1901_v52 = vsel %vm3206_vm2, %v1896_v44, %v1900_v45  ;;  %v1831_v54 = vsel %vm3206_vm2, %v1826_v47, %v1830_v48 }
  0x91   : > { %2855 = vmatprep.subr.bf16.mxu0 %v3053_v3  ;;  %2865 = vmatprep.mubr.bf16.mxu0 %v2493_v7  ;;  %v2496_v56 = vcombine.low %v1887_v51, %v1901_v52  ;;  %v2494_v57 = vcombine.low %v1831_v54, %v1845_v55 }
  0x92   : > { %2869 = vmatprep.mubr.bf16.mxu1 %v2495_v10 }
  0x93   : > { %2884 = vmatpush3.bf16.msra.mxu1 %v3053_v3 }
  0x94   : > { %2856 = vmatpush3.bf16.msra.mxu0 %v3053_v3  ;;  %2877 = vmatprep.subr.bf16.mxu1 %v3054_v15 }
  0x95   : > { %2857 = vmatprep.subr.bf16.mxu0 %v3054_v15 }
  0x97   : > { %2885 = vmatpush3.bf16.msra.mxu1 %v3054_v15 }
  0x98   : > { %2858 = vmatpush3.bf16.msra.mxu0 %v3054_v15  ;;  %2878 = vmatprep.subr.bf16.mxu1 %v3055_v20  ;;  %v2506_v15 = vld [vmem:[%s3465_s3] ss:$0 sm:$0xff] }
  0x99   : > { %2859 = vmatprep.subr.bf16.mxu0 %v3055_v20 }
  0x9b   : > { %2886 = vmatpush3.bf16.msra.mxu1 %v3055_v20 }
  0x9c   : > { %2860 = vmatpush3.bf16.msra.mxu0 %v3055_v20  ;;  %2879 = vmatprep.subr.bf16.mxu1 %v3056_v37 }
  0x9d   : > { %2861 = vmatprep.subr.bf16.mxu0 %v3056_v37 }
  0x9f   : > { %2887 = vmatpush3.bf16.msra.mxu1 %v3056_v37 }
  0xa0   : > { %2862 = vmatpush3.bf16.msra.mxu0 %v3056_v37  ;;  %2880 = vmatprep.subr.bf16.mxu1 %v3057_v46 }
  0xa1   : > { %2863 = vmatprep.subr.bf16.mxu0 %v3057_v46 }
  0xa3   : > { %2888 = vmatpush3.bf16.msra.mxu1 %v3057_v46 }
  0xa4   : > { %2864 = vmatpush3.bf16.msra.mxu0 %v3057_v46 }
  0xa6   : > { %2870 = vmatmul.mubr.bf16.vlgmr.msra.gmra.mrb[8].mxu1 %v2496_v56 }
  0xa7   : > { %2866 = vmatmul.mubr.bf16.vlgmr.msra.gmra.mrb[0].mxu0 %v2494_v57 }
 0x159   : > { %v2747_v58 = vpop.f32.mrb[0].mxu1 }
 0x15a   : > { %v940_v59 = vpop.f32.mrb[1].mxu1 }
 0x15b   : > { %v2748_v60 = vpop.f32.mrb[2].mxu1 }
 0x15c   : > { %v943_v61 = vpop.f32.mrb[3].mxu1 }
 0x161   : > { %v2751_v62 = vpop.f32.mrb[4].mxu1 }
 0x162   : > { %v2847_v63 = vpop.f32.mrb[4].mxu0  ;;  %v956_v0 = vpop.f32.mrb[5].mxu1 }
 0x163   : > { %v2893_v1 = vadd.f32 %v2847_v63, %v2751_v62  ;;  %v1751_v2 = vpop.f32.mrb[5].mxu0  ;;  %v2752_v3 = vpop.f32.mrb[6].mxu1 }
 0x164   : > { %v2895_v4 = vadd.f32 %v1751_v2, %v956_v0  ;;  %v2848_v53 = vpop.f32.mrb[6].mxu0  ;;  %v959_v5 = vpop.f32.mrb[7].mxu1 }
 0x165   : > { %v2897_v6 = vadd.f32 %v2848_v53, %v2752_v3  ;;  %v1754_v7 = vpop.f32.mrb[7].mxu0 }
 0x166   : > { %v2899_v8 = vadd.f32 %v1754_v7, %v959_v5 }
 0x179   : > { %v2871_v10 = vpop.f32.mrb[8].mxu1 }
 0x17a   : > { %v2867_v11 = vpop.f32.mrb[0].mxu0  ;;  %v2894_v12 = vadd.f32 %v2893_v1, %v2871_v10  ;;  %v2033_v13 = vpop.f32.mrb[9].mxu1 }
 0x17b   : > { %v2889_v14 = vadd.f32 %v2867_v11, %v2747_v58  ;;  %v2017_v16 = vpop.f32.mrb[1].mxu0  ;;  %v2896_v17 = vadd.f32 %v2895_v4, %v2033_v13  ;;  %v2872_v18 = vpop.f32.mrb[10].mxu1 }
 0x17c   : > { %v2069_v19 = vmul.f32 %v2894_v12, %v2505_v9  ;;  %v2890_v20 = vadd.f32 %v2017_v16, %v940_v59  ;;  %v2868_v21 = vpop.f32.mrb[2].mxu0  ;;  %v2898_v22 = vadd.f32 %v2897_v6, %v2872_v18  ;;  %v2036_v23 = vpop.f32.mrb[11].mxu1 }
 0x17d   : > { %v2065_v24 = vmul.f32 %v2889_v14, %v2505_v9  ;;  %v2067_v25 = vmul.f32 %v2896_v17, %v2505_v9  ;;  %v2891_v26 = vadd.f32 %v2868_v21, %v2748_v60  ;;  %v2020_v27 = vpop.f32.mrb[3].mxu0  ;;  %v2900_v28 = vadd.f32 %v2899_v8, %v2036_v23 }
 0x17e   : > { %v2084_v29 = vadd.f32 %v2506_v15, %v2069_v19  ;;  %v2063_v30 = vmul.f32 %v2890_v20, %v2505_v9  ;;  %v2070_v31 = vmul.f32 %v2898_v22, %v2505_v9  ;;  %v2892_v32 = vadd.f32 %v2020_v27, %v943_v61 }
 0x17f   : > { %v2080_v33 = vadd.f32 %v2506_v15, %v2065_v24  ;;  %v2082_v34 = vadd.f32 %v2506_v15, %v2067_v25  ;;  %v2066_v35 = vmul.f32 %v2891_v26, %v2505_v9  ;;  %v2068_v36 = vmul.f32 %v2900_v28, %v2505_v9 }
 0x180   : > { %v2078_v37 = vadd.f32 %v2506_v15, %v2063_v30  ;;  %v2085_v38 = vadd.f32 %v2506_v15, %v2070_v31  ;;  %v2064_v39 = vmul.f32 %v2892_v32, %v2505_v9  ;;  %v2092_v42 = vmax.f32 %v2084_v29, 0.0 }
 0x181   : > { %v2081_v40 = vadd.f32 %v2506_v15, %v2066_v35  ;;  %v2083_v41 = vadd.f32 %v2506_v15, %v2068_v36  ;;  %v2088_v45 = vmax.f32 %v2080_v33, 0.0  ;;  %v2090_v46 = vmax.f32 %v2082_v34, 0.0 }
 0x182   : > { %v2093_v43 = vmax.f32 %v2085_v38, 0.0  ;;  %v2079_v44 = vadd.f32 %v2506_v15, %v2064_v39  ;;  %v2086_v49 = vmax.f32 %v2078_v37, 0.0 }
 0x183   : > { %v2089_v47 = vmax.f32 %v2081_v40, 0.0  ;;  %v2091_v48 = vmax.f32 %v2083_v41, 0.0 }
 0x184   : > { %v2544_v50 = vpack.c.bf16 %v2093_v43, %v2092_v42  ;;  %v2087_v51 = vmax.f32 %v2079_v44, 0.0 }
 0x185   : > { %v2534_v52 = vpack.c.bf16 %v2089_v47, %v2088_v45  ;;  %v2539_v54 = vpack.c.bf16 %v2091_v48, %v2090_v46 }
 0x186   : > { %2548 = vst [vmem:[%s197_s6 + $0x18] sm:$0xff] %v2544_v50   ;;  %v2529_v55 = vpack.c.bf16 %v2087_v51, %v2086_v49 }
 0x187   : > { %2546 = vst [vmem:[%s197_s6 + $0x8] sm:$0xff] %v2534_v52   ;;  %2547 = vst [vmem:[%s197_s6 + $0x10] sm:$0xff] %v2539_v54  }
 0x188   : > { %2530 = vst [vmem:[%s197_s6] sm:$0xff] %v2529_v55  }
 0x189 PF: > { %s14_s15 = sadd.s32 1, %s3064_s15  }
 0x18a   : > { %p11_p4 = scmp.ge.s32.totalorder %s14_s15, 4  }
 0x18c   :  { %13 = sbr.rel (!%p11_p4) target bundleno = 1 (0x1), region = 79 }

// kernel: basic_block_forward.3
= control target key start
LH: loop header
LB: loop body
LE: loop exit
PB: predicated region body
PF: predicated region fallthrough
CT: control target
= control target key end

     0   :  { %s3544_s27 = smov 0   ;;  %s4187_s0 = inlined_call_operand.vmem [shape: bf16[2,1,1,10,10,128], index: 0, kind: input, shape index: {}]   ;;  %s4188_s1 = inlined_call_operand.vmem [shape: bf16[3,3,128,128], index: 1, kind: input, shape index: {}]   ;;  %s4189_s2 = inlined_call_operand.vmem [shape: f32[1,128], index: 2, kind: input, shape index: {}]   ;;  %s4190_s3 = inlined_call_operand.vmem [shape: f32[1,128], index: 3, kind: input, shape index: {}]   ;;  %s4191_s4 = inlined_call_operand.vmem [shape: bf16[2,64,128], index: 4, kind: input, shape index: {}]   ;;  %s4192_s5 = inlined_call_operand.vmem [shape: bf16[128,128], index: 5, kind: input, shape index: {}]   ;;  %s4193_s6 = inlined_call_operand.vmem [shape: f32[1,128], index: 6, kind: input, shape index: {}]   ;;  %s4194_s7 = inlined_call_operand.vmem [shape: f32[1,128], index: 7, kind: input, shape index: {}]   ;;  %s4195_s8 = inlined_call_operand.vmem [shape: f32[2,64,128], index: 8, kind: output, shape index: {}]  }
   0x1 LB: > { %s2608_s28 = sadd.s32 4294967295, %s3497_s27   ;;  %p2612_p0 = scmp.ge.s32.totalorder %s3497_s27, 1  ;;  %s3497_s27 = sphi %s3544_s27, %s18_s27  }
   0x2   : > { %p272_p1 = scmp.lt.s32.totalorder %s3497_s27, 3 }
   0x4   : > { %p273_p2 = pnand %p2612_p0, %p272_p1 }
   0x5   : > { %v3395_v0 = vld [vmem:[%s4188_s1 + $0x40] sm:$0xff] (!%p273_p2)   ;;  %p311_p3 = scmp.lt.s32.totalorder (!%p273_p2), %s2608_s28, 1  ;;  %v3397_v2 = vld [vmem:[%s4188_s1 + $0x48] sm:$0xff] (!%p273_p2)   ;;  %v3399_v4 = vld [vmem:[%s4188_s1 + $0x50] sm:$0xff] (!%p273_p2)   ;;  %vm359_vm0 = vsmask.f32 (!%p273_p2), 3328 }
   0x6   : > { %276 = sbr.rel (%p273_p2) target bundleno = 406 (0x196), region = 52  ;;  %v3396_v1 = vld [vmem:[%s4188_s1 + $0x100] sm:$0xff] (!%p273_p2)   ;;  %3082 = vmatprep.subr.bf16.mxu1 (!%p273_p2), %v3395_v0  ;;  %v3398_v3 = vld [vmem:[%s4188_s1 + $0x108] sm:$0xff] (!%p273_p2)   ;;  %v3400_v5 = vld [vmem:[%s4188_s1 + $0x110] sm:$0xff] (!%p273_p2)   ;;  %vm360_vm1 = vsmask.f32 (!%p273_p2), 7440 }
   0x7   : > { %3178 = vmatprep.subr.bf16.mxu0 (!%p273_p2), %v3396_v1  ;;  %3083 = vmatpush3.bf16.msra.mxu1 (!%p273_p2), %v3395_v0  ;;  %v3401_v6 = vld [vmem:[%s4188_s1 + $0x58] sm:$0xff] (!%p273_p2)   ;;  %v3403_v8 = vld [vmem:[%s4188_s1 + $0x60] sm:$0xff] (!%p273_p2)   ;;  %v3405_v10 = vld [vmem:[%s4188_s1 + $0x68] sm:$0xff] (!%p273_p2)   ;;  %vm781_vm3 = vcmask (!%p273_p2), 1042432   ;;  %vm782_vm4 = vcmask (!%p273_p2), 1046532  }
   0x8   : > { %3179 = vmatpush3.bf16.msra.mxu0 (!%p273_p2), %v3396_v1  ;;  %3084 = vmatprep.subr.bf16.mxu1 (!%p273_p2), %v3397_v2  ;;  %v3402_v7 = vld [vmem:[%s4188_s1 + $0x118] sm:$0xff] (!%p273_p2)   ;;  %v3404_v9 = vld [vmem:[%s4188_s1 + $0x120] sm:$0xff] (!%p273_p2)   ;;  %v3406_v14 = vld [vmem:[%s4188_s1 + $0x128] sm:$0xff] (!%p273_p2)  }
   0x9   : > { %3180 = vmatprep.subr.bf16.mxu0 (!%p273_p2), %v3398_v3  ;;  %v3407_v22 = vld [vmem:[%s4188_s1 + $0x70] sm:$0xff] (!%p273_p2)   ;;  %v3409_v37 = vld [vmem:[%s4188_s1 + $0x78] sm:$0xff] (!%p273_p2)   ;;  %vm3633_vm2 = vmor (!%p273_p2), %vm359_vm0, %vm360_vm1 }
   0xa   : > { %v3408_v23 = vld [vmem:[%s4188_s1 + $0x130] sm:$0xff] (!%p273_p2)   ;;  %v3410_v47 = vld [vmem:[%s4188_s1 + $0x138] sm:$0xff] (!%p273_p2)   ;;  %v3411_v63 = vld [vmem:[%s4188_s1] sm:$0xff] (!%p273_p2)  }
   0xb   : > { %3085 = vmatpush3.bf16.msra.mxu1 (!%p273_p2), %v3397_v2  ;;  %v3665_v1 = vld [vmem:[%s4188_s1 + $0x140] sm:$0xff] (!%p273_p2)   ;;  %vm3807_vm5 = vmor (!%p273_p2), %vm781_vm3, %vm782_vm4 }
   0xc   : > { %3181 = vmatpush3.bf16.msra.mxu0 (!%p273_p2), %v3398_v3  ;;  %3086 = vmatprep.subr.bf16.mxu1 (!%p273_p2), %v3399_v4  ;;  %v3480_v38 = vld [vmem:[%s4192_s5 + $0x20] sm:$0xff] (!%p273_p2)  }
   0xd   : > { %s4201_s28 = smov (!%p311_p3, %s2608_s28), 1  ;;  %3182 = vmatprep.subr.bf16.mxu0 %v3400_v5 }
   0xe   : > { %s3386_s23 = smul.u32 80, %s4201_s28  ;;  %s2960_s22 = sshll.u32 %s4201_s28, 5 }
   0xf   : > { %3087 = vmatpush3.bf16.msra.mxu1 %v3399_v4  ;;  %s4056_s12 = scalar_lea.vmem %s4191_s4, %s2960_s22  ;;  %s2961_s9 = sshll.u32 %s4201_s28, 6 }
  0x10   : > { %3183 = vmatpush3.bf16.msra.mxu0 %v3400_v5  ;;  %3088 = vmatprep.subr.bf16.mxu1 %v3401_v6  ;;  %s3588_s10 = scalar_lea.vmem %s4187_s0, %s3386_s23  ;;  %s4168_s14 = scalar_lea.vmem %s4195_s8, %s2961_s9 }
  0x11   : > { %3184 = vmatprep.subr.bf16.mxu0 %v3402_v7  ;;  %v3594_v11 = vld [vmem:[%s3588_s10] sm:$0xf]  ;;  %v3597_v12 = vld [vmem:[%s3588_s10 + $0x8] sm:$0xf]  ;;  %v3600_v13 = vld [vmem:[%s3588_s10 + $0x4] sm:$0x1] }
  0x12   : > { %v3606_v15 = vld [vmem:[%s3588_s10 + $0xc] sm:$0x1]  ;;  %v363_v16 = vshrl.u32 %v3594_v11, 16  ;;  %v366_v17 = vshll.u32 %v3594_v11, 16  ;;  %v372_v18 = vshll.u32 %v3600_v13, 16  ;;  %v377_v19 = vshrl.u32 %v3597_v12, 16 }
  0x13   : > { %3089 = vmatpush3.bf16.msra.mxu1 %v3401_v6  ;;  %v380_v20 = vshll.u32 %v3597_v12, 16  ;;  %v386_v21 = vshll.u32 %v3606_v15, 16  ;;  %v2730_v30 = vld [vmem:[%s3588_s10 + $0x8] sm:$0xf]  ;;  %v3622_v31 = vld [vmem:[%s3588_s10 + $0xc] sm:$0x1] }
  0x14   : > { %3185 = vmatpush3.bf16.msra.mxu0 %v3402_v7  ;;  %3090 = vmatprep.subr.bf16.mxu1 %v3403_v8  ;;  %v365_v24 = vrot.slane %v363_v16, 4  ;;  %v368_v25 = vrot.slane %v366_v17, 5  ;;  %v374_v26 = vrot.slane %v372_v18, 5  ;;  %v379_v27 = vrot.slane %v377_v19, 4  ;;  %v2732_v33 = vld [vmem:[%s3588_s10 + $0x10] sm:$0xf] }
  0x15   : > { %3186 = vmatprep.subr.bf16.mxu0 %v3404_v9  ;;  %v382_v28 = vrot.slane %v380_v20, 5  ;;  %v388_v29 = vrot.slane %v386_v21, 5  ;;  %v3626_v34 = vld [vmem:[%s3588_s10 + $0x14] sm:$0x1]  ;;  %v1158_v35 = vshrl.u32 %v2730_v30, 16  ;;  %v1161_v36 = vshll.u32 %v2730_v30, 16 }
  0x16   : > { %v369_v32 = vor.u32 %v368_v25, %v365_v24  ;;  %v1167_v40 = vshll.u32 %v3622_v31, 16  ;;  %v1172_v41 = vshrl.u32 %v2732_v33, 16  ;;  %v1175_v42 = vshll.u32 %v2732_v33, 16  ;;  %v3643_v51 = vld [vmem:[%s3588_s10 + $0x10] sm:$0xf] }
  0x17   : > { %3091 = vmatpush3.bf16.msra.mxu1 %v3403_v8  ;;  %v383_v39 = vor.u32 %v382_v28, %v379_v27  ;;  %v1160_v44 = vrot.slane %v1158_v35, 4  ;;  %v1163_v45 = vrot.slane %v1161_v36, 5  ;;  %v1181_v46 = vshll.u32 %v3626_v34, 16  ;;  %v3648_v55 = vld [vmem:[%s3588_s10 + $0x18] sm:$0xf] }
  0x18   : > { %3187 = vmatpush3.bf16.msra.mxu0 %v3404_v9  ;;  %3092 = vmatprep.subr.bf16.mxu1 %v3405_v10  ;;  %v370_v43 = vrot.slane %v369_v32, 4  ;;  %v1174_v49 = vrot.slane %v1172_v41, 4  ;;  %v1177_v50 = vrot.slane %v1175_v42, 5  ;;  %v1169_v54 = vrot.slane %v1167_v40, 5  ;;  %v3651_v56 = vld [vmem:[%s3588_s10 + $0x14] sm:$0x1] }
  0x19   : > { %3188 = vmatprep.subr.bf16.mxu0 %v3406_v14  ;;  %v384_v48 = vrot.slane %v383_v39, 4  ;;  %v1164_v53 = vor.u32 %v1163_v45, %v1160_v44  ;;  %v1183_v59 = vrot.slane %v1181_v46, 5  ;;  %v3656_v60 = vld [vmem:[%s3588_s10 + $0x1c] sm:$0x1]  ;;  %v391_v61 = vshrl.u32 %v3643_v51, 16 }
  0x1a   : > { %v375_v52 = vsel %vm3633_vm2, %v370_v43, %v374_v26  ;;  %v1178_v58 = vor.u32 %v1177_v50, %v1174_v49  ;;  %v394_v2 = vshll.u32 %v3643_v51, 16  ;;  %v400_v3 = vshll.u32 %v3651_v56, 16  ;;  %v2734_v8 = vld [vmem:[%s3588_s10 + $0x18] sm:$0xf]  ;;  %v3676_v16 = vld [vmem:[%s3588_s10 + $0x1c] sm:$0x1] }
  0x1b   : > { %3093 = vmatpush3.bf16.msra.mxu1 %v3405_v10  ;;  %v389_v57 = vsel %vm3633_vm2, %v384_v48, %v388_v29  ;;  %v1165_v0 = vrot.slane %v1164_v53, 4  ;;  %v393_v5 = vrot.slane %v391_v61, 4  ;;  %v405_v6 = vshrl.u32 %v3648_v55, 16  ;;  %v2736_v17 = vld [vmem:[%s3588_s10 + $0x20] sm:$0xf]  ;;  %v3413_v43 = vld [vmem:[%s4188_s1 + $0x8] sm:$0xff]  }
  0x1c   : > { %3189 = vmatpush3.bf16.msra.mxu0 %v3406_v14  ;;  %3094 = vmatprep.subr.bf16.mxu1 %v3407_v22  ;;  %v2634_v62 = vcombine.low %v375_v52, %v389_v57  ;;  %v1179_v4 = vrot.slane %v1178_v58, 4  ;;  %v408_v7 = vshll.u32 %v3648_v55, 16  ;;  %v396_v10 = vrot.slane %v394_v2, 5  ;;  %v3682_v21 = vld [vmem:[%s3588_s10 + $0x24] sm:$0x1] }
  0x1d   : > { %3190 = vmatprep.subr.bf16.mxu0 %v3408_v23  ;;  %v1170_v9 = vsel %vm3633_vm2, %v1165_v0, %v1169_v54  ;;  %v414_v14 = vshll.u32 %v3656_v60, 16  ;;  %v407_v19 = vrot.slane %v405_v6, 4  ;;  %v402_v24 = vrot.slane %v400_v3, 5  ;;  %v3414_v54 = vld [vmem:[%s4188_s1 + $0x148] sm:$0xff]   ;;  %v3712_v0 = vld [vmem:[%s3588_s10 + $0x24] sm:$0x1] }
  0x1e   : > { %3098 = vmatprep.mubr.bf16.mxu1 %v2634_v62  ;;  %v1184_v18 = vsel %vm3633_vm2, %v1179_v4, %v1183_v59  ;;  %v410_v20 = vrot.slane %v408_v7, 5  ;;  %v1186_v27 = vshrl.u32 %v2734_v8, 16  ;;  %v1189_v28 = vshll.u32 %v2734_v8, 16  ;;  %v3415_v59 = vld [vmem:[%s4188_s1 + $0x10] sm:$0xff]   ;;  %v3706_v62 = vld [vmem:[%s3588_s10 + $0x20] sm:$0xf] }
  0x1f   : > { %3095 = vmatpush3.bf16.msra.mxu1 %v3407_v22  ;;  %v2762_v22 = vcombine.low %v1170_v9, %v1184_v18  ;;  %v416_v25 = vrot.slane %v414_v14, 5  ;;  %v1195_v29 = vshll.u32 %v3676_v16, 16  ;;  %v1200_v32 = vshrl.u32 %v2736_v17, 16  ;;  %v3715_v2 = vld [vmem:[%s3588_s10 + $0x2c] sm:$0x1]  ;;  %v3416_v9 = vld [vmem:[%s4188_s1 + $0x150] sm:$0xff]  }
  0x20   : > { %3191 = vmatpush3.bf16.msra.mxu0 %v3408_v23  ;;  %3096 = vmatprep.subr.bf16.mxu1 %v3409_v37  ;;  %v397_v23 = vor.u32 %v396_v10, %v393_v5  ;;  %v411_v26 = vor.u32 %v410_v20, %v407_v19  ;;  %v1203_v33 = vshll.u32 %v2736_v17, 16  ;;  %v1209_v35 = vshll.u32 %v3682_v21, 16  ;;  %v3417_v10 = vld [vmem:[%s4188_s1 + $0x18] sm:$0xff]  }
  0x21   : > { %3192 = vmatprep.subr.bf16.mxu0 %v3410_v47  ;;  %3194 = vmatprep.mubr.bf16.mxu0 %v2762_v22  ;;  %v1191_v39 = vrot.slane %v1189_v28, 5  ;;  %v1202_v41 = vrot.slane %v1200_v32, 4  ;;  %v1197_v46 = vrot.slane %v1195_v29, 5  ;;  %v1449_v57 = vrot.slane %v3622_v31, 5  ;;  %v3418_v29 = vld [vmem:[%s4188_s1 + $0x158] sm:$0xff]  }
  0x22   : > { %v398_v30 = vrot.slane %v397_v23, 4  ;;  %v412_v36 = vrot.slane %v411_v26, 4  ;;  %v1205_v42 = vrot.slane %v1203_v33, 5  ;;  %v419_v3 = vshrl.u32 %v3706_v62, 16  ;;  %v2738_v23 = vld [vmem:[%s3588_s10 + $0x28] sm:$0xf] }
  0x23   : > { %3097 = vmatpush3.bf16.msra.mxu1 %v3409_v37  ;;  %v1188_v37 = vrot.slane %v1186_v27, 4  ;;  %v422_v4 = vshll.u32 %v3706_v62, 16  ;;  %v428_v5 = vshll.u32 %v3712_v0, 16  ;;  %v442_v8 = vshll.u32 %v3715_v2, 16  ;;  %v3736_v26 = vld [vmem:[%s3588_s10 + $0x34] sm:$0x1] }
  0x24   : > { %3193 = vmatpush3.bf16.msra.mxu0 %v3410_v47  ;;  %3106 = vmatprep.subr.bf16.mxu1 %v3411_v63  ;;  %v403_v40 = vsel %vm3633_vm2, %v398_v30, %v402_v24  ;;  %v417_v44 = vsel %vm3633_vm2, %v412_v36, %v416_v25  ;;  %v1211_v47 = vrot.slane %v1209_v35, 5  ;;  %v1206_v49 = vor.u32 %v1205_v42, %v1202_v41  ;;  %v3732_v24 = vld [vmem:[%s3588_s10 + $0x2c] sm:$0x1]  ;;  %v2740_v25 = vld [vmem:[%s3588_s10 + $0x30] sm:$0xf]  ;;  %v3419_v30 = vld [vmem:[%s4188_s1 + $0x20] sm:$0xff]  }
  0x25   : > { %3202 = vmatprep.subr.bf16.mxu0 %v3665_v1  ;;  %v1192_v45 = vor.u32 %v1191_v39, %v1188_v37  ;;  %v2635_v48 = vcombine.low %v403_v40, %v417_v44  ;;  %v421_v14 = vrot.slane %v419_v3, 4  ;;  %v424_v17 = vrot.slane %v422_v4, 5 }
  0x26   : > { %v1207_v52 = vrot.slane %v1206_v49, 4  ;;  %v430_v18 = vrot.slane %v428_v5, 5  ;;  %v444_v22 = vrot.slane %v442_v8, 5  ;;  %v1214_v27 = vshrl.u32 %v2738_v23, 16  ;;  %v2742_v5 = vld [vmem:[%s3588_s10 + $0x38] sm:$0xf] }
  0x27   : > { %v1193_v50 = vrot.slane %v1192_v45, 4  ;;  %3099 = vmatmul.mubr.bf16.vlgmr.msra.gmra.mrb[0].mxu1 %v2635_v48  ;;  %v1217_v28 = vshll.u32 %v2738_v23, 16  ;;  %v1223_v33 = vshll.u32 %v3732_v24, 16  ;;  %v1228_v35 = vshrl.u32 %v2740_v25, 16 }
  0x28   : > { %3107 = vmatpush3.bf16.msra.mxu1 %v3411_v63  ;;  %v1212_v58 = vsel %vm3633_vm2, %v1207_v52, %v1211_v47  ;;  %v3709_v63 = vld [vmem:[%s3588_s10 + $0x28] sm:$0xf]  ;;  %v1231_v36 = vshll.u32 %v2740_v25, 16  ;;  %v1216_v39 = vrot.slane %v1214_v27, 4  ;;  %v1237_v41 = vshll.u32 %v3736_v26, 16 }
  0x29   : > { %v1198_v53 = vsel %vm3633_vm2, %v1193_v50, %v1197_v46  ;;  %3108 = vmatprep.subr.bf16.mxu1 %v3413_v43  ;;  %v433_v6 = vshrl.u32 %v3709_v63, 16  ;;  %v436_v7 = vshll.u32 %v3709_v63, 16  ;;  %v1219_v40 = vrot.slane %v1217_v28, 5  ;;  %v3747_v46 = vld [vmem:[%s3588_s10 + $0x30] sm:$0xf] }
  0x2a   : > { %v2763_v61 = vcombine.low %v1198_v53, %v1212_v58  ;;  %v1230_v44 = vrot.slane %v1228_v35, 4  ;;  %v1233_v45 = vrot.slane %v1231_v36, 5  ;;  %v1239_v49 = vrot.slane %v1237_v41, 5  ;;  %v3752_v50 = vld [vmem:[%s3588_s10 + $0x38] sm:$0xf] }
  0x2b   : > { %v435_v19 = vrot.slane %v433_v6, 4  ;;  %v438_v20 = vrot.slane %v436_v7, 5  ;;  %v1220_v48 = vor.u32 %v1219_v40, %v1216_v39  ;;  %v3755_v52 = vld [vmem:[%s3588_s10 + $0x34] sm:$0x1]  ;;  %v447_v53 = vshrl.u32 %v3747_v46, 16  ;;  %v3421_v6 = vld [vmem:[%s4188_s1 + $0x28] sm:$0xff]  }
  0x2c   : > { %3195 = vmatmul.mubr.bf16.vlgmr.msra.gmra.mrb[0].mxu0 %v2763_v61  ;;  %3109 = vmatpush3.bf16.msra.mxu1 %v3413_v43  ;;  %v1225_v43 = vrot.slane %v1223_v33, 5  ;;  %v3764_v61 = vld [vmem:[%s3588_s10 + $0x3c] sm:$0x1]  ;;  %v450_v3 = vshll.u32 %v3747_v46, 16  ;;  %v456_v4 = vshll.u32 %v3755_v52, 16  ;;  %v1242_v28 = vshrl.u32 %v2742_v5, 16 }
  0x2d   : > { %3203 = vmatpush3.bf16.msra.mxu0 %v3665_v1  ;;  %3110 = vmatprep.subr.bf16.mxu1 %v3415_v59  ;;  %v425_v1 = vor.u32 %v424_v17, %v421_v14  ;;  %v439_v32 = vor.u32 %v438_v20, %v435_v19  ;;  %v1221_v8 = vrot.slane %v1220_v48, 4  ;;  %v461_v14 = vshrl.u32 %v3752_v50, 16  ;;  %v3774_v17 = vld [vmem:[%s3588_s10 + $0x3c] sm:$0x1]  ;;  %v3782_v27 = vld [vmem:[%s3588_s10 + $0x44] sm:$0x1] }
  0x2e   : > { %3204 = vmatprep.subr.bf16.mxu0 %v3414_v54  ;;  %v452_v19 = vrot.slane %v450_v3, 5  ;;  %v458_v20 = vrot.slane %v456_v4, 5  ;;  %v470_v25 = vshll.u32 %v3764_v61, 16  ;;  %v1245_v36 = vshll.u32 %v2742_v5, 16 }
  0x2f   : > { %v426_v37 = vrot.slane %v425_v1, 4  ;;  %v440_v42 = vrot.slane %v439_v32, 4  ;;  %v1226_v23 = vsel %vm3633_vm2, %v1221_v8, %v1225_v43  ;;  %v463_v1 = vrot.slane %v461_v14, 4 }
  0x30   : > { %3111 = vmatpush3.bf16.msra.mxu1 %v3415_v59  ;;  %v1234_v59 = vor.u32 %v1233_v45, %v1230_v44  ;;  %v472_v40 = vrot.slane %v470_v25, 5  ;;  %v1244_v41 = vrot.slane %v1242_v28, 4  ;;  %v1247_v45 = vrot.slane %v1245_v36, 5  ;;  %v2776_v25 = vld [vmem:[%s3588_s10 + $0x18] sm:$0xe] }
  0x31   : > { %3205 = vmatpush3.bf16.msra.mxu0 %v3414_v54  ;;  %3112 = vmatprep.subr.bf16.mxu1 %v3417_v10  ;;  %v431_v47 = vsel %vm3633_vm2, %v426_v37, %v430_v18  ;;  %v3420_v54 = vld [vmem:[%s4188_s1 + $0x160] sm:$0xff]   ;;  %v445_v58 = vsel %vm3633_vm2, %v440_v42, %v444_v22  ;;  %v464_v22 = vshll.u32 %v3752_v50, 16  ;;  %v3423_v37 = vld [vmem:[%s4188_s1 + $0x30] sm:$0xff]   ;;  %v1251_v42 = vshll.u32 %v3774_v17, 16  ;;  %v3426_v28 = vld [vmem:[%s4188_s1 + $0x178] sm:$0xff]  }
  0x32   : > { %3206 = vmatprep.subr.bf16.mxu0 %v3416_v9  ;;  %v2636_v7 = vcombine.low %v431_v47, %v445_v58  ;;  %v1235_v18 = vrot.slane %v1234_v59, 4  ;;  %v1453_v47 = vrot.slane %v3626_v34, 5  ;;  %v1457_v48 = vrot.slane %v3676_v16, 5  ;;  %v3424_v58 = vld [vmem:[%s4188_s1 + $0x170] sm:$0xff]  }
  0x33   : > { %v466_v35 = vrot.slane %v464_v22, 5  ;;  %v1248_v4 = vor.u32 %v1247_v45, %v1244_v41  ;;  %v1253_v34 = vrot.slane %v1251_v42, 5  ;;  %v1461_v22 = vrot.slane %v3682_v21, 5  ;;  %v3429_v41 = vld [vmem:[%s4188_s1 + $0x180] sm:$0xff]  }
  0x34   : > { %3113 = vmatpush3.bf16.msra.mxu1 %v3417_v10  ;;  %v449_v10 = vrot.slane %v447_v53, 4  ;;  %3102 = vmatprep.mubr.bf16.mxu1 %v2636_v7  ;;  %v1240_v32 = vsel %vm3633_vm2, %v1235_v18, %v1239_v49  ;;  %v1265_v53 = vshll.u32 %v3782_v27, 16  ;;  %v2774_v7 = vld [vmem:[%s3588_s10 + $0x8] sm:$0xe]  ;;  %v2784_v36 = vrot.slane %v2776_v25, 9 }
  0x35   : > { %3207 = vmatpush3.bf16.msra.mxu0 %v3416_v9  ;;  %3114 = vmatprep.subr.bf16.mxu1 %v3419_v30  ;;  %v2744_v9 = vld [vmem:[%s3588_s10 + $0x40] sm:$0xf]  ;;  %v2764_v39 = vcombine.low %v1226_v23, %v1240_v32  ;;  %v467_v44 = vor.u32 %v466_v35, %v463_v1  ;;  %v2782_v14 = vrot.slane %v2774_v7, 9  ;;  %v1249_v18 = vrot.slane %v1248_v4, 4 }
  0x36   : > { %3208 = vmatprep.subr.bf16.mxu0 %v3418_v29  ;;  %v453_v33 = vor.u32 %v452_v19, %v449_v10  ;;  %v1259_v49 = vshll.u32 %v2744_v9, 16  ;;  %v2775_v10 = vld [vmem:[%s3588_s10 + $0x10] sm:$0xe]  ;;  %v2646_v19 = vcombine.low %v3594_v11, %v3597_v12  ;;  %v1267_v1 = vrot.slane %v1265_v53, 5  ;;  %v2777_v12 = vld [vmem:[%s3588_s10 + $0x20] sm:$0xe] }
  0x37   : > { %3198 = vmatprep.mubr.bf16.mxu0 %v2764_v39  ;;  %v468_v3 = vrot.slane %v467_v44, 4  ;;  %v1450_v32 = vsel %vm3807_vm5, %v2782_v14, %v1449_v57  ;;  %v1254_v21 = vsel %vm3633_vm2, %v1249_v18, %v1253_v34  ;;  %v3428_v35 = vld [vmem:[%s4188_s1 + $0x80] sm:$0xff]   ;;  %v1458_v42 = vsel %vm3807_vm5, %v2784_v36, %v1457_v48  ;;  %v3433_v44 = vld [vmem:[%s4188_s1 + $0x90] sm:$0xff]  }
  0x38   : > { %3115 = vmatpush3.bf16.msra.mxu1 %v3419_v30  ;;  %v3422_v30 = vld [vmem:[%s4188_s1 + $0x168] sm:$0xff]   ;;  %v454_v43 = vrot.slane %v453_v33, 4  ;;  %v1261_v16 = vrot.slane %v1259_v49, 5  ;;  %v1465_v45 = vrot.slane %v3732_v24, 5  ;;  %v1473_v53 = vrot.slane %v3774_v17, 5  ;;  %v3437_v18 = vld [vmem:[%s4188_s1 + $0xa0] sm:$0xff]  }
  0x39   : > { %3209 = vmatpush3.bf16.msra.mxu0 %v3418_v29  ;;  %3116 = vmatprep.subr.bf16.mxu1 %v3421_v6  ;;  %v1256_v29 = vshrl.u32 %v2744_v9, 16  ;;  %v1477_v24 = vrot.slane %v3782_v27, 5  ;;  %v790_v34 = vrot.slane %v3606_v15, 5  ;;  %v794_v17 = vrot.slane %v3651_v56, 5  ;;  %v758_v15 = vld [vmem:[%s3588_s10 + $0x8] sm:$0xe] }
  0x3a   : > { %3210 = vmatprep.subr.bf16.mxu0 %v3420_v54  ;;  %v459_v59 = vsel %vm3633_vm2, %v454_v43, %v458_v20  ;;  %v2783_v20 = vrot.slane %v2775_v10, 9  ;;  %v3431_v43 = vld [vmem:[%s4188_s1 + $0x88] sm:$0xff]   ;;  %v3434_v10 = vld [vmem:[%s4188_s1 + $0x190] sm:$0xff]   ;;  %v2659_v14 = vrot.slane %v758_v15, 9  ;;  %v761_v36 = vld [vmem:[%s3588_s10 + $0x20] sm:$0xe] }
  0x3b   : > { %v1258_v5 = vrot.slane %v1256_v29, 4  ;;  %v1469_v29 = vrot.slane %v3736_v26, 5  ;;  %v2649_v26 = vcombine.low %v3747_v46, %v3752_v50  ;;  %v3435_v46 = vld [vmem:[%s4188_s1 + $0x98] sm:$0xff]  }
  0x3c   : > { %3117 = vmatpush3.bf16.msra.mxu1 %v3421_v6  ;;  %v3425_v6 = vld [vmem:[%s4188_s1 + $0x38] sm:$0xff]   ;;  %v1454_v11 = vsel %vm3807_vm5, %v2783_v20, %v1453_v47 }
  0x3d   : > { %3211 = vmatpush3.bf16.msra.mxu0 %v3420_v54  ;;  %3118 = vmatprep.subr.bf16.mxu1 %v3423_v37  ;;  %v473_v54 = vsel %vm3633_vm2, %v468_v3, %v472_v40  ;;  %v1262_v23 = vor.u32 %v1261_v16, %v1258_v5  ;;  %v2806_v57 = vcombine.low %v1450_v32, %v1454_v11  ;;  %v757_v16 = vld [vmem:[%s3588_s10] sm:$0xe]  ;;  %v3436_v20 = vld [vmem:[%s4188_s1 + $0x198] sm:$0xff]  }
  0x3e   : > { %3212 = vmatprep.subr.bf16.mxu0 %v3422_v30  ;;  %v2637_v9 = vcombine.low %v459_v59, %v473_v54  ;;  %v2647_v40 = vcombine.low %v3643_v51, %v3648_v55  ;;  %v2648_v51 = vcombine.low %v3706_v62, %v3709_v63  ;;  %v786_v55 = vrot.slane %v3600_v13, 5  ;;  %v3432_v62 = vld [vmem:[%s4188_s1 + $0x188] sm:$0xff]   ;;  %v2779_v63 = vld [vmem:[%s3588_s10 + $0x30] sm:$0xe]  ;;  %v2781_v59 = vld [vmem:[%s3588_s10 + $0x40] sm:$0xe] }
  0x3f   : > { %v1263_v33 = vrot.slane %v1262_v23, 4  ;;  %v2778_v13 = vld [vmem:[%s3588_s10 + $0x28] sm:$0xe]  ;;  %v2787_v49 = vrot.slane %v2779_v63, 9  ;;  %v2789_v7 = vrot.slane %v2781_v59, 9  ;;  %v2658_v56 = vrot.slane %v757_v16, 9 }
  0x40   : > { %3119 = vmatpush3.bf16.msra.mxu1 %v3423_v37  ;;  %v2785_v37 = vrot.slane %v2777_v12, 9  ;;  %v2786_v48 = vrot.slane %v2778_v13, 9  ;;  %v798_v54 = vrot.slane %v3656_v60, 5  ;;  %v759_v23 = vld [vmem:[%s3588_s10 + $0x10] sm:$0xe]  ;;  %v3449_v63 = vld [vmem:[%s4188_s1 + $0x1c0] sm:$0xff]  }
  0x41   : > { %3213 = vmatpush3.bf16.msra.mxu0 %v3422_v30  ;;  %3103 = vmatmul.mubr.bf16.gmra.mrb[4].mxu1 %v2637_v9  ;;  %v1268_v31 = vsel %vm3633_vm2, %v1263_v33, %v1267_v1  ;;  %v1470_v4 = vsel %vm3807_vm5, %v2787_v49, %v1469_v29  ;;  %v791_v9 = vsel %vm3807_vm5, %v2659_v14, %v790_v34  ;;  %v760_v60 = vld [vmem:[%s3588_s10 + $0x18] sm:$0xe]  ;;  %v2660_v25 = vrot.slane %v759_v23, 9  ;;  %v3439_v33 = vld [vmem:[%s4188_s1 + $0xa8] sm:$0xff]   ;;  %v3955_v59 = vld [vmem:[%s3588_s10 + $0x1c] sm:$0x1] }
  0x42   : > { %3214 = vmatprep.subr.bf16.mxu0 %v3424_v58  ;;  %3120 = vmatprep.subr.bf16.mxu1 %v3425_v6  ;;  %v2765_v39 = vcombine.low %v1254_v21, %v1268_v31  ;;  %v1462_v30 = vsel %vm3807_vm5, %v2785_v37, %v1461_v22  ;;  %v1466_v3 = vsel %vm3807_vm5, %v2786_v48, %v1465_v45  ;;  %v3448_v32 = vld [vmem:[%s3588_s10 + $0x10] ss:$8 sps:$4 sm:$0xff]   ;;  %v762_v37 = vld [vmem:[%s3588_s10 + $0x28] sm:$0xe]  ;;  %v810_v45 = vrot.slane %v3755_v52, 5 }
  0x43   : > { %3122 = vmatprep.mubr.bf16.mxu1 %v2646_v19  ;;  %v2807_v47 = vcombine.low %v1458_v42, %v1462_v30  ;;  %v2808_v27 = vcombine.low %v1466_v3, %v1470_v4  ;;  %v787_v19 = vsel %vm3807_vm5, %v2658_v56, %v786_v55  ;;  %v795_v11 = vsel %vm3807_vm5, %v2660_v25, %v794_v17  ;;  %v3442_v31 = vld [vmem:[%s4188_s1 + $0xb0] sm:$0xff]   ;;  %v764_v55 = vld [vmem:[%s3588_s10 + $0x38] sm:$0xe]  ;;  %v3451_v52 = vld [vmem:[%s4188_s1 + $0xc8] sm:$0xff]  }
  0x44   : > { %3121 = vmatpush3.bf16.msra.mxu1 %v3425_v6  ;;  %3199 = vmatmul.mubr.bf16.gmra.mrb[4].mxu0 %v2765_v39  ;;  %v1478_v6 = vsel %vm3807_vm5, %v2789_v7, %v1477_v24  ;;  %v2682_v1 = vcombine.low %v787_v19, %v791_v9  ;;  %v3445_v39 = vld [vmem:[%s4188_s1 + $0xb8] sm:$0xff]   ;;  %v2663_v42 = vrot.slane %v762_v37, 9  ;;  %v806_v30 = vrot.slane %v3715_v2, 5  ;;  %v3450_v49 = vld [vmem:[%s3588_s10 + $0x20] ss:$8 sps:$4 sm:$0xff]   ;;  %v3453_v16 = vld [vmem:[%s4188_s1 + $0xd0] sm:$0xff]  }
  0x45   : > { %3215 = vmatpush3.bf16.msra.mxu0 %v3424_v58  ;;  %3130 = vmatprep.subr.bf16.mxu1 %v3428_v35  ;;  %v2780_v58 = vld [vmem:[%s3588_s10 + $0x38] sm:$0xe]  ;;  %v2665_v13 = vrot.slane %v764_v55, 9  ;;  %v1844_v17 = vshll.u32 %v3955_v59, 16  ;;  %v3454_v23 = vld [vmem:[%s4188_s1 + $0x1d0] sm:$0xff]   ;;  %v3457_v25 = vld [vmem:[%s4188_s1 + $0xe0] sm:$0xff]  }
  0x46   : > { %3216 = vmatprep.subr.bf16.mxu0 %v3426_v28  ;;  %3218 = vmatprep.mubr.bf16.mxu0 %v2806_v57  ;;  %v2788_v5 = vrot.slane %v2780_v58, 9  ;;  %v3440_v57 = vld [vmem:[%s4188_s1 + $0x1a8] sm:$0xff]   ;;  %v807_v2 = vsel %vm3807_vm5, %v2663_v42, %v806_v30  ;;  %v3446_v29 = vld [vmem:[%s4188_s1 + $0x1b8] sm:$0xff]  }
  0x47   : > { %v2856_v58 = vld [vmem:[%s3588_s10 + $0x18] sm:$0xf]  ;;  %v3996_v30 = vld [vmem:[%s3588_s10 + $0x2c] sm:$0x1] }
  0x48   : > { %v1474_v50 = vsel %vm3807_vm5, %v2788_v5, %v1473_v53  ;;  %v2854_v53 = vld [vmem:[%s3588_s10 + $0x10] sm:$0xf]  ;;  %v1835_v7 = vshrl.u32 %v2856_v58, 16  ;;  %v1838_v34 = vshll.u32 %v2856_v58, 16 }
  0x49   : > { %3217 = vmatpush3.bf16.msra.mxu0 %v3426_v28  ;;  %3123 = vmatmul.mubr.bf16.vlgmr.msra.gmra.mrb[0].mxu1 %v2647_v40  ;;  %v2809_v22 = vcombine.low %v1474_v50, %v1478_v6  ;;  %v2661_v28 = vrot.slane %v760_v60, 9  ;;  %v2662_v40 = vrot.slane %v761_v36, 9  ;;  %v1821_v3 = vshrl.u32 %v2854_v53, 16  ;;  %v3462_v6 = vld [vmem:[%s3588_s10 + $0x30] ss:$8 sps:$4 sm:$0xff]  }
  0x4a   : > { %3226 = vmatprep.subr.bf16.mxu0 %v3429_v41  ;;  %3131 = vmatpush3.bf16.msra.mxu1 %v3428_v35  ;;  %v3438_v35 = vld [vmem:[%s4188_s1 + $0x1a0] sm:$0xff]   ;;  %v1824_v4 = vshll.u32 %v2854_v53, 16  ;;  %v1837_v15 = vrot.slane %v1835_v7, 4  ;;  %v1840_v56 = vrot.slane %v1838_v34, 5  ;;  %v2868_v7 = vld [vmem:[%s3588_s10 + $0x48] sm:$0xf] }
  0x4b   : > { %3132 = vmatprep.subr.bf16.mxu1 %v3431_v43  ;;  %3126 = vmatprep.mubr.bf16.mxu1 %v2648_v51  ;;  %v799_v12 = vsel %vm3807_vm5, %v2661_v28, %v798_v54  ;;  %v763_v51 = vld [vmem:[%s3588_s10 + $0x30] sm:$0xe]  ;;  %v3464_v28 = vld [vmem:[%s3588_s10 + $0x40] ss:$8 sps:$4 sm:$0xff]   ;;  %v3990_v36 = vld [vmem:[%s3588_s10 + $0x24] sm:$0x1] }
  0x4c   : > { %3219 = vmatmul.mubr.bf16.vlgmr.msra.gmra.mrb[0].mxu0 %v2807_v47  ;;  %v2683_v21 = vcombine.low %v795_v11, %v799_v12  ;;  %v814_v47 = vrot.slane %v3764_v61, 5  ;;  %v3947_v61 = vld [vmem:[%s3588_s10 + $0x14] sm:$0x1]  ;;  %v1826_v50 = vrot.slane %v1824_v4, 5  ;;  %v1841_v19 = vor.u32 %v1840_v56, %v1837_v15  ;;  %v2860_v12 = vld [vmem:[%s3588_s10 + $0x28] sm:$0xf] }
  0x4d   : > { %3227 = vmatpush3.bf16.msra.mxu0 %v3429_v41  ;;  %3222 = vmatprep.mubr.bf16.mxu0 %v2808_v27  ;;  %v802_v41 = vrot.slane %v3712_v0, 5  ;;  %v1830_v5 = vshll.u32 %v3947_v61, 16  ;;  %v3452_v27 = vld [vmem:[%s4188_s1 + $0x1c8] sm:$0xff]   ;;  %v1863_v37 = vshrl.u32 %v2860_v12, 16  ;;  %v1858_v55 = vshll.u32 %v3990_v36, 16  ;;  %v3463_v34 = vld [vmem:[%s4188_s1 + $0x1f0] sm:$0xff]  }
  0x4e   : > { %3133 = vmatpush3.bf16.msra.mxu1 %v3431_v43  ;;  %3228 = vmatprep.subr.bf16.mxu0 %v3432_v62  ;;  %v3443_v43 = vld [vmem:[%s4188_s1 + $0x1b0] sm:$0xff]   ;;  %v1842_v60 = vrot.slane %v1841_v19, 4  ;;  %v1919_v19 = vshrl.u32 %v2868_v7, 16 }
  0x4f   : > { %3134 = vmatprep.subr.bf16.mxu1 %v3433_v44  ;;  %v803_v0 = vsel %vm3807_vm5, %v2662_v40, %v802_v41  ;;  %v1832_v54 = vrot.slane %v1830_v5, 5  ;;  %v3458_v40 = vld [vmem:[%s4188_s1 + $0x1e0] sm:$0xff]  }
  0x50   : > { %v2684_v48 = vcombine.low %v803_v0, %v807_v2  ;;  %v1872_v2 = vshll.u32 %v3996_v30, 16 }
  0x51   : > { %3127 = vmatmul.mubr.bf16.gmra.mrb[4].mxu1 %v2649_v26  ;;  %3229 = vmatpush3.bf16.msra.mxu0 %v3432_v62  ;;  %v2664_v62 = vrot.slane %v763_v51, 9  ;;  %v815_v26 = vsel %vm3807_vm5, %v2665_v13, %v814_v47  ;;  %v3465_v47 = vld [vmem:[%s4188_s1 + $0xf8] sm:$0xff]   ;;  %v4011_v13 = vld [vmem:[%s3588_s10 + $0x34] sm:$0x1] }
  0x52   : > { %3135 = vmatpush3.bf16.msra.mxu1 %v3433_v44  ;;  %3230 = vmatprep.subr.bf16.mxu0 %v3434_v10  ;;  %v3447_v44 = vld [vmem:[%s4188_s1 + $0xc0] sm:$0xff]   ;;  %v1886_v4 = vshll.u32 %v4011_v13, 16 }
  0x53   : > { %3136 = vmatprep.subr.bf16.mxu1 %v3435_v46  ;;  %3146 = vmatprep.mubr.bf16.mxu1 %v2682_v1  ;;  %v811_v24 = vsel %vm3807_vm5, %v2664_v62, %v810_v45  ;;  %v2858_v1 = vld [vmem:[%s3588_s10 + $0x20] sm:$0xf]  ;;  %v3460_v45 = vld [vmem:[%s4188_s1 + $0x1e8] sm:$0xff]  }
  0x54   : > { %3223 = vmatmul.mubr.bf16.gmra.mrb[4].mxu0 %v2809_v22  ;;  %v3455_v22 = vld [vmem:[%s4188_s1 + $0xd8] sm:$0xff]  }
  0x55   : > { %3231 = vmatpush3.bf16.msra.mxu0 %v3434_v10  ;;  %3242 = vmatprep.mubr.bf16.mxu0 %v3448_v32  ;;  %v2685_v10 = vcombine.low %v811_v24, %v815_v26  ;;  %v2866_v26 = vld [vmem:[%s3588_s10 + $0x40] sm:$0xf] }
  0x56   : > { %3137 = vmatpush3.bf16.msra.mxu1 %v3435_v46  ;;  %3232 = vmatprep.subr.bf16.mxu0 %v3436_v20  ;;  %v1823_v46 = vrot.slane %v1821_v3, 4  ;;  %v1874_v3 = vrot.slane %v1872_v2, 5  ;;  %v1905_v56 = vshrl.u32 %v2866_v26, 16  ;;  %v3476_v2 = vld [vmem:[%s4192_s5 + $0x10] sm:$0xff]  }
  0x57   : > { %3138 = vmatprep.subr.bf16.mxu1 %v3437_v18 }
  0x58   : > { %v1827_v14 = vor.u32 %v1826_v50, %v1823_v46  ;;  %v3470_v50 = vld [vmem:[%s4192_s5] sm:$0xff]  }
  0x59   : > { %3233 = vmatpush3.bf16.msra.mxu0 %v3436_v20  ;;  %v1846_v20 = vrot.slane %v1844_v17, 5 }
  0x5a   : > { %3139 = vmatpush3.bf16.msra.mxu1 %v3437_v18  ;;  %3234 = vmatprep.subr.bf16.mxu0 %v3438_v35  ;;  %v3467_v18 = vld [vmem:[%s3588_s10 + $0x8] ss:$8 sps:$4 sm:$0xff]   ;;  %v1828_v9 = vrot.slane %v1827_v14, 4  ;;  %v3466_v14 = vld [vmem:[%s4188_s1 + $0x1f8] sm:$0xff]  }
  0x5b   : > { %3140 = vmatprep.subr.bf16.mxu1 %v3439_v33  ;;  %v1847_v11 = vsel %vm3633_vm2, %v1842_v60, %v1846_v20  ;;  %v1922_v20 = vshll.u32 %v2868_v7, 16  ;;  %v1907_v60 = vrot.slane %v1905_v56, 4  ;;  %v3486_v56 = vld [vmem:[%s4192_s5 + $0x38] sm:$0xff]  }
  0x5c   : > { %v1833_v32 = vsel %vm3633_vm2, %v1828_v9, %v1832_v54 }
  0x5d   : > { %3235 = vmatpush3.bf16.msra.mxu0 %v3438_v35  ;;  %v3456_v35 = vld [vmem:[%s4188_s1 + $0x1d8] sm:$0xff]  }
  0x5e   : > { %3141 = vmatpush3.bf16.msra.mxu1 %v3439_v33  ;;  %3236 = vmatprep.subr.bf16.mxu0 %v3440_v57  ;;  %v1852_v33 = vshll.u32 %v2858_v1, 16 }
  0x5f   : > { %3142 = vmatprep.subr.bf16.mxu1 %v3442_v31 }
  0x60   : > { %v1854_v42 = vrot.slane %v1852_v33, 5 }
  0x61   : > { %3237 = vmatpush3.bf16.msra.mxu0 %v3440_v57  ;;  %v3459_v57 = vld [vmem:[%s4188_s1 + $0xe8] sm:$0xff]  }
  0x62   : > { %3143 = vmatpush3.bf16.msra.mxu1 %v3442_v31  ;;  %3238 = vmatprep.subr.bf16.mxu0 %v3443_v43  ;;  %v2886_v31 = vcombine.low %v1833_v32, %v1847_v11  ;;  %v1921_v32 = vrot.slane %v1919_v19, 4  ;;  %v1924_v11 = vrot.slane %v1922_v20, 5  ;;  %v2902_v19 = vld [vmem:[%s3588_s10 + $0x30] sm:$0xe]  ;;  %v2903_v20 = vld [vmem:[%s3588_s10 + $0x38] sm:$0xe] }
  0x63   : > { %3144 = vmatprep.subr.bf16.mxu1 %v3445_v39 }
  0x65   : > { %3239 = vmatpush3.bf16.msra.mxu0 %v3443_v43  ;;  %v1865_v43 = vrot.slane %v1863_v37, 4 }
  0x66   : > { %3145 = vmatpush3.bf16.msra.mxu1 %v3445_v39  ;;  %3240 = vmatprep.subr.bf16.mxu0 %v3446_v29  ;;  %v1866_v39 = vshll.u32 %v2860_v12, 16 }
  0x67   : > { %3154 = vmatprep.subr.bf16.mxu1 %v3447_v44 }
  0x68   : > { %v1868_v51 = vrot.slane %v1866_v39, 5 }
  0x69   : > { %3147 = vmatmul.mubr.bf16.vlgmr.msra.gmra.mrb[0].mxu1 %v2683_v21  ;;  %3241 = vmatpush3.bf16.msra.mxu0 %v3446_v29  ;;  %v1849_v21 = vshrl.u32 %v2858_v1, 16  ;;  %v2862_v29 = vld [vmem:[%s3588_s10 + $0x30] sm:$0xf] }
  0x6a   : > { %3155 = vmatpush3.bf16.msra.mxu1 %v3447_v44  ;;  %3150 = vmatprep.mubr.bf16.mxu1 %v2684_v48  ;;  %v3461_v44 = vld [vmem:[%s4188_s1 + $0xf0] sm:$0xff]   ;;  %v1869_v62 = vor.u32 %v1868_v51, %v1865_v43  ;;  %v4015_v48 = vld [vmem:[%s3588_s10 + $0x3c] sm:$0x1]  ;;  %v1880_v53 = vshll.u32 %v2862_v29, 16 }
  0x6b   : > { %3156 = vmatprep.subr.bf16.mxu1 %v3451_v52  ;;  %3250 = vmatprep.subr.bf16.mxu0 %v3449_v63  ;;  %v1851_v41 = vrot.slane %v1849_v21, 4  ;;  %v1900_v46 = vshll.u32 %v4015_v48, 16 }
  0x6c   : > { %3243 = vmatmul.mubr.bf16.vlgmr.msra.gmra.mrb[0].mxu0 %v3450_v49  ;;  %v1877_v49 = vshrl.u32 %v2862_v29, 16 }
  0x6d   : > { %3251 = vmatpush3.bf16.msra.mxu0 %v3449_v63  ;;  %3246 = vmatprep.mubr.bf16.mxu0 %v3462_v6  ;;  %v1855_v0 = vor.u32 %v1854_v42, %v1851_v41  ;;  %v2864_v63 = vld [vmem:[%s3588_s10 + $0x38] sm:$0xf]  ;;  %v1870_v6 = vrot.slane %v1869_v62, 4  ;;  %v3469_v42 = vld [vmem:[%s4188_s1 + $0x200] sm:$0xff]  }
  0x6e   : > { %3157 = vmatpush3.bf16.msra.mxu1 %v3451_v52  ;;  %3252 = vmatprep.subr.bf16.mxu0 %v3452_v27  ;;  %v4017_v52 = vrot.slane %v1858_v55, 5  ;;  %v1891_v24 = vshrl.u32 %v2864_v63, 16  ;;  %v1894_v5 = vshll.u32 %v2864_v63, 16  ;;  %v1879_v17 = vrot.slane %v1877_v49, 4  ;;  %v2898_v55 = vld [vmem:[%s3588_s10 + $0x10] sm:$0xe] }
  0x6f   : > { %3158 = vmatprep.subr.bf16.mxu1 %v3453_v16  ;;  %v1856_v58 = vrot.slane %v1855_v0, 4  ;;  %v2899_v0 = vld [vmem:[%s3588_s10 + $0x18] sm:$0xe]  ;;  %v3471_v63 = vld [vmem:[%s4188_s1 + $0x208] sm:$0xff]  }
  0x70   : > { %v1896_v15 = vrot.slane %v1894_v5, 5  ;;  %v3474_v49 = vld [vmem:[%s3588_s10 + $0x38] ss:$8 sps:$4 sm:$0xff]  }
  0x71   : > { %3151 = vmatmul.mubr.bf16.gmra.mrb[4].mxu1 %v2685_v10  ;;  %3253 = vmatpush3.bf16.msra.mxu0 %v3452_v27  ;;  %v1882_v27 = vrot.slane %v1880_v53, 5  ;;  %v1908_v10 = vshll.u32 %v2866_v26, 16  ;;  %v1861_v33 = vsel %vm3633_vm2, %v1856_v58, %v4017_v52  ;;  %v2906_v53 = vrot.slane %v2898_v55, 9 }
  0x72   : > { %3159 = vmatpush3.bf16.msra.mxu1 %v3453_v16  ;;  %3170 = vmatprep.mubr.bf16.mxu1 %v3467_v18  ;;  %v1893_v16 = vrot.slane %v1891_v24, 4  ;;  %v4034_v18 = vld [vmem:[%s3588_s10 + $0x44] sm:$0x1]  ;;  %v2112_v24 = vrot.slane %v3947_v61, 5  ;;  %v2907_v26 = vrot.slane %v2899_v0, 9  ;;  %v2116_v58 = vrot.slane %v3955_v59, 5 }
  0x73   : > { %3160 = vmatprep.subr.bf16.mxu1 %v3455_v22  ;;  %3254 = vmatprep.subr.bf16.mxu0 %v3454_v23  ;;  %v1883_v54 = vor.u32 %v1882_v27, %v1879_v17  ;;  %v1910_v1 = vrot.slane %v1908_v10, 5  ;;  %v1914_v39 = vshll.u32 %v4034_v18, 16  ;;  %v3475_v61 = vld [vmem:[%s4188_s1 + $0x210] sm:$0xff]   ;;  %v3477_v27 = vld [vmem:[%s4188_s1 + $0x218] sm:$0xff]  }
  0x74   : > { %3247 = vmatmul.mubr.bf16.gmra.mrb[4].mxu0 %v3464_v28  ;;  %v1897_v9 = vor.u32 %v1896_v15, %v1893_v16  ;;  %v1902_v28 = vrot.slane %v1900_v46, 5  ;;  %v2113_v59 = vsel %vm3807_vm5, %v2906_v53, %v2112_v24  ;;  %v3482_v46 = vld [vmem:[%s4192_s5 + $0x28] sm:$0xff]   ;;  %v3483_v10 = vld [vmem:[%s4188_s1 + $0x230] sm:$0xff]  }
  0x75   : > { %3255 = vmatpush3.bf16.msra.mxu0 %v3454_v23  ;;  %3266 = vmatprep.mubr.bf16.mxu0 %v2886_v31  ;;  %v4038_v23 = vld [vmem:[%s3588_s10 + $0x4c] sm:$0x1]  ;;  %v1884_v12 = vrot.slane %v1883_v54, 4  ;;  %v3473_v31 = vld [vmem:[%s3588_s10 + $0x28] ss:$8 sps:$4 sm:$0xff]   ;;  %v1911_v37 = vor.u32 %v1910_v1, %v1907_v60  ;;  %v1916_v29 = vrot.slane %v1914_v39, 5 }
  0x76   : > { %3161 = vmatpush3.bf16.msra.mxu1 %v3455_v22  ;;  %3256 = vmatprep.subr.bf16.mxu0 %v3456_v35  ;;  %v3468_v22 = vld [vmem:[%s3588_s10 + $0x18] ss:$8 sps:$4 sm:$0xff]   ;;  %v1898_v21 = vrot.slane %v1897_v9, 4  ;;  %v1928_v41 = vshll.u32 %v4038_v23, 16  ;;  %v3481_v15 = vld [vmem:[%s4188_s1 + $0x228] sm:$0xff]   ;;  %v2120_v9 = vrot.slane %v3990_v36, 5 }
  0x77   : > { %3162 = vmatprep.subr.bf16.mxu1 %v3457_v25  ;;  %v2901_v54 = vld [vmem:[%s3588_s10 + $0x28] sm:$0xe]  ;;  %v2124_v1 = vrot.slane %v3996_v30, 5 }
  0x78   : > { %v1903_v51 = vsel %vm3633_vm2, %v1898_v21, %v1902_v28  ;;  %v1930_v62 = vrot.slane %v1928_v41, 5  ;;  %v2909_v60 = vrot.slane %v2901_v54, 9  ;;  %v2910_v28 = vrot.slane %v2902_v19, 9  ;;  %v3488_v21 = vld [vmem:[%s4056_s12 + $0x8] sm:$0xff]  }
  0x79   : > { %3257 = vmatpush3.bf16.msra.mxu0 %v3456_v35  ;;  %v1875_v35 = vsel %vm3633_vm2, %v1870_v6, %v1874_v3  ;;  %v3487_v3 = vld [vmem:[%s4056_s12] sm:$0xff]   ;;  %v3484_v6 = vld [vmem:[%s4192_s5 + $0x30] sm:$0xff]  }
  0x7a   : > { %3163 = vmatpush3.bf16.msra.mxu1 %v3457_v25  ;;  %3258 = vmatprep.subr.bf16.mxu0 %v3458_v40  ;;  %v1888_v25 = vrot.slane %v1886_v4, 5  ;;  %v3478_v4 = vld [vmem:[%s4192_s5 + $0x18] sm:$0xff]   ;;  %v2125_v30 = vsel %vm3807_vm5, %v2909_v60, %v2124_v1 }
  0x7b   : > { %3164 = vmatprep.subr.bf16.mxu1 %v3459_v57 }
  0x7c   : > { %v1889_v43 = vsel %vm3633_vm2, %v1884_v12, %v1888_v25  ;;  %v3485_v25 = vld [vmem:[%s4188_s1 + $0x238] sm:$0xff]   ;;  %v2132_v12 = vrot.slane %v4015_v48, 5  ;;  %v2905_v48 = vld [vmem:[%s3588_s10 + $0x48] sm:$0xe] }
  0x7d   : > { %3259 = vmatpush3.bf16.msra.mxu0 %v3458_v40  ;;  %v1925_v40 = vor.u32 %v1924_v11, %v1921_v32  ;;  %v2888_v52 = vcombine.low %v1889_v43, %v1903_v51  ;;  %v2128_v32 = vrot.slane %v4011_v13, 5  ;;  %v2911_v11 = vrot.slane %v2903_v20, 9  ;;  %v3490_v43 = vld [vmem:[%s4056_s12 + $0x18] sm:$0xff]  }
  0x7e   : > { %3165 = vmatpush3.bf16.msra.mxu1 %v3459_v57  ;;  %3260 = vmatprep.subr.bf16.mxu0 %v3460_v45  ;;  %v3472_v57 = vld [vmem:[%s4192_s5 + $0x8] sm:$0xff]   ;;  %v2913_v41 = vrot.slane %v2905_v48, 9 }
  0x7f   : > { %3166 = vmatprep.subr.bf16.mxu1 %v3461_v44  ;;  %v2133_v13 = vsel %vm3807_vm5, %v2911_v11, %v2132_v12 }
  0x81   : > { %3261 = vmatpush3.bf16.msra.mxu0 %v3460_v45  ;;  %v1912_v45 = vrot.slane %v1911_v37, 4  ;;  %v2136_v37 = vrot.slane %v4034_v18, 5 }
  0x82   : > { %3167 = vmatpush3.bf16.msra.mxu1 %v3461_v44  ;;  %3262 = vmatprep.subr.bf16.mxu0 %v3463_v34  ;;  %v2887_v44 = vcombine.low %v1861_v33, %v1875_v35  ;;  %v3489_v33 = vld [vmem:[%s4056_s12 + $0x10] sm:$0xff]   ;;  %v2129_v35 = vsel %vm3807_vm5, %v2910_v28, %v2128_v32 }
  0x83   : > { %3168 = vmatprep.subr.bf16.mxu1 %v3465_v47  ;;  %v1917_v5 = vsel %vm3633_vm2, %v1912_v45, %v1916_v29  ;;  %v2932_v39 = vcombine.low %v2129_v35, %v2133_v13 }
  0x85   : > { %3263 = vmatpush3.bf16.msra.mxu0 %v3463_v34  ;;  %v2117_v34 = vsel %vm3807_vm5, %v2907_v26, %v2116_v58  ;;  %v2942_v58 = vld [vmem:[%s4189_s2] ss:$0 sm:$0xff] }
  0x86   : > { %3169 = vmatpush3.bf16.msra.mxu1 %v3465_v47  ;;  %3264 = vmatprep.subr.bf16.mxu0 %v3466_v14  ;;  %v1926_v47 = vrot.slane %v1925_v40, 4  ;;  %v2930_v16 = vcombine.low %v2113_v59, %v2117_v34 }
  0x87   : > { %3298 = vmatprep.subr.bf16.mxu1 %v3470_v50 }
  0x88   : > { %v1931_v7 = vsel %vm3633_vm2, %v1926_v47, %v1930_v62 }
  0x89   : > { %3171 = vmatmul.mubr.bf16.vlgmr.msra.gmra.mrb[0].mxu1 %v3468_v22  ;;  %3265 = vmatpush3.bf16.msra.mxu0 %v3466_v14  ;;  %v2889_v17 = vcombine.low %v1917_v5, %v1931_v7  ;;  %v2900_v14 = vld [vmem:[%s3588_s10 + $0x20] sm:$0xe] }
  0x8a   : > { %3299 = vmatpush3.bf16.msra.mxu1 %v3470_v50  ;;  %3174 = vmatprep.mubr.bf16.mxu1 %v3473_v31  ;;  %v3479_v50 = vld [vmem:[%s4188_s1 + $0x220] sm:$0xff]   ;;  %v2908_v22 = vrot.slane %v2900_v14, 9 }
  0x8b   : > { %3300 = vmatprep.subr.bf16.mxu1 %v3472_v57  ;;  %3274 = vmatprep.subr.bf16.mxu0 %v3469_v42  ;;  %v2904_v31 = vld [vmem:[%s3588_s10 + $0x40] sm:$0xe] }
  0x8c   : > { %3267 = vmatmul.mubr.bf16.vlgmr.msra.gmra.mrb[0].mxu0 %v2887_v44  ;;  %v2121_v36 = vsel %vm3807_vm5, %v2908_v22, %v2120_v9  ;;  %v2912_v40 = vrot.slane %v2904_v31, 9 }
  0x8d   : > { %3275 = vmatpush3.bf16.msra.mxu0 %v3469_v42  ;;  %3270 = vmatprep.mubr.bf16.mxu0 %v2888_v52  ;;  %v2140_v42 = vrot.slane %v4038_v23, 5  ;;  %v2956_v52 = vld [vmem:[%s4193_s6] ss:$0 sm:$0xff] }
  0x8e   : > { %3301 = vmatpush3.bf16.msra.mxu1 %v3472_v57  ;;  %3276 = vmatprep.subr.bf16.mxu0 %v3471_v63  ;;  %v2931_v57 = vcombine.low %v2121_v36, %v2125_v30  ;;  %v2137_v51 = vsel %vm3807_vm5, %v2912_v40, %v2136_v37 }
  0x8f   : > { %3302 = vmatprep.subr.bf16.mxu1 %v3476_v2  ;;  %v2141_v55 = vsel %vm3807_vm5, %v2913_v41, %v2140_v42 }
  0x90   : > { %v2933_v44 = vcombine.low %v2137_v51, %v2141_v55 }
  0x91   : > { %3175 = vmatmul.mubr.bf16.gmra.mrb[4].mxu1 %v3474_v49  ;;  %3277 = vmatpush3.bf16.msra.mxu0 %v3471_v63 }
  0x92   : > { %3303 = vmatpush3.bf16.msra.mxu1 %v3476_v2  ;;  %3314 = vmatprep.mubr.bf16.mxu1 %v3487_v3  ;;  %v4156_v3 = vld [vmem:[%s4194_s7] ss:$0 sm:$0xff] }
  0x93   : > { %3304 = vmatprep.subr.bf16.mxu1 %v3478_v4  ;;  %3278 = vmatprep.subr.bf16.mxu0 %v3475_v61 }
  0x94   : > { %3271 = vmatmul.mubr.bf16.gmra.mrb[4].mxu0 %v2889_v17 }
  0x95   : > { %3279 = vmatpush3.bf16.msra.mxu0 %v3475_v61  ;;  %3290 = vmatprep.mubr.bf16.mxu0 %v2930_v16  ;;  %v2943_v61 = vld [vmem:[%s4190_s3] ss:$0 sm:$0xff] }
  0x96   : > { %3305 = vmatpush3.bf16.msra.mxu1 %v3478_v4  ;;  %3280 = vmatprep.subr.bf16.mxu0 %v3477_v27 }
  0x97   : > { %3306 = vmatprep.subr.bf16.mxu1 %v3480_v38 }
  0x99   : > { %3281 = vmatpush3.bf16.msra.mxu0 %v3477_v27 }
  0x9a   : > { %3307 = vmatpush3.bf16.msra.mxu1 %v3480_v38  ;;  %3282 = vmatprep.subr.bf16.mxu0 %v3479_v50 }
  0x9b   : > { %3308 = vmatprep.subr.bf16.mxu1 %v3482_v46 }
  0x9d   : > { %3283 = vmatpush3.bf16.msra.mxu0 %v3479_v50 }
  0x9e   : > { %3309 = vmatpush3.bf16.msra.mxu1 %v3482_v46  ;;  %3284 = vmatprep.subr.bf16.mxu0 %v3481_v15 }
  0x9f   : > { %3310 = vmatprep.subr.bf16.mxu1 %v3484_v6 }
  0xa1   : > { %3285 = vmatpush3.bf16.msra.mxu0 %v3481_v15 }
  0xa2   : > { %3311 = vmatpush3.bf16.msra.mxu1 %v3484_v6  ;;  %3286 = vmatprep.subr.bf16.mxu0 %v3483_v10 }
  0xa3   : > { %3312 = vmatprep.subr.bf16.mxu1 %v3486_v56 }
  0xa5   : > { %3287 = vmatpush3.bf16.msra.mxu0 %v3483_v10 }
  0xa6   : > { %3313 = vmatpush3.bf16.msra.mxu1 %v3486_v56  ;;  %3288 = vmatprep.subr.bf16.mxu0 %v3485_v25 }
  0xa9   : > { %3315 = vmatmul.mubr.bf16.vlgmr.msra.gmra.mrb[8].mxu1 %v3488_v21  ;;  %3289 = vmatpush3.bf16.msra.mxu0 %v3485_v25 }
  0xaa   : > { %3318 = vmatprep.mubr.bf16.mxu1 %v3489_v33 }
  0xac   : > { %3291 = vmatmul.mubr.bf16.vlgmr.msra.gmra.mrb[0].mxu0 %v2931_v57 }
  0xad   : > { %3294 = vmatprep.mubr.bf16.mxu0 %v2932_v39 }
  0xb1   : > { %3319 = vmatmul.mubr.bf16.gmra.mrb[12].mxu1 %v3490_v43 }
  0xb4   : > { %3295 = vmatmul.mubr.bf16.gmra.mrb[4].mxu0 %v2933_v44 }
 0x15c   : > { %v3172_v0 = vpop.f32.mrb[0].mxu1 }
 0x15d   : > { %v1102_v18 = vpop.f32.mrb[1].mxu1 }
 0x15e   : > { %v3173_v2 = vpop.f32.mrb[2].mxu1 }
 0x15f   : > { %v1105_v45 = vpop.f32.mrb[3].mxu1 }
 0x164   : > { %v3176_v29 = vpop.f32.mrb[4].mxu1 }
 0x165   : > { %v1118_v47 = vpop.f32.mrb[5].mxu1 }
 0x166   : > { %v3177_v62 = vpop.f32.mrb[6].mxu1 }
 0x167   : > { %v4145_v23 = vpop.f32.mrb[7].mxu1 }
 0x17c   : > { %v3316_v63 = vpop.f32.mrb[8].mxu1 }
 0x17d   : > { %v2456_v49 = vpop.f32.mrb[9].mxu1  ;;  %v2496_v24 = vmul.f32 %v3316_v63, %v2956_v52 }
 0x17e   : > { %v3317_v8 = vpop.f32.mrb[10].mxu1  ;;  %v2494_v4 = vmul.f32 %v2956_v52, %v2456_v49 }
 0x17f   : > { %v2459_v53 = vpop.f32.mrb[11].mxu1  ;;  %v3292_v26 = vpop.f32.mrb[0].mxu0  ;;  %v2511_v38 = vadd.f32 %v4156_v3, %v2496_v24  ;;  %v2497_v16 = vmul.f32 %v3317_v8, %v2956_v52 }
 0x180   : > { %v3322_v5 = vadd.f32 %v3292_v26, %v3172_v0  ;;  %v2257_v7 = vpop.f32.mrb[1].mxu0  ;;  %v2509_v15 = vadd.f32 %v4156_v3, %v2494_v4  ;;  %v2495_v10 = vmul.f32 %v2956_v52, %v2459_v53 }
 0x181   : > { %v3323_v59 = vadd.f32 %v2257_v7, %v1102_v18  ;;  %v3293_v34 = vpop.f32.mrb[2].mxu0  ;;  %v2512_v32 = vadd.f32 %v4156_v3, %v2497_v16 }
 0x182   : > { %v2305_v17 = vmul.f32 %v3322_v5, %v2942_v58  ;;  %v3324_v27 = vadd.f32 %v3293_v34, %v3173_v2  ;;  %v2260_v46 = vpop.f32.mrb[3].mxu0  ;;  %v2510_v33 = vadd.f32 %v4156_v3, %v2495_v10 }
 0x183   : > { %v2303_v6 = vmul.f32 %v3323_v59, %v2942_v58  ;;  %v3325_v56 = vadd.f32 %v2260_v46, %v1105_v45 }
 0x184   : > { %v3320_v50 = vpop.f32.mrb[12].mxu1  ;;  %v2320_v54 = vadd.f32 %v2943_v61, %v2305_v17  ;;  %v2306_v19 = vmul.f32 %v3324_v27, %v2942_v58 }
 0x185   : > { %v2472_v14 = vpop.f32.mrb[13].mxu1  ;;  %v2500_v20 = vmul.f32 %v3320_v50, %v2956_v52  ;;  %v2318_v9 = vadd.f32 %v2943_v61, %v2303_v6  ;;  %v2304_v60 = vmul.f32 %v3325_v56, %v2942_v58 }
 0x186   : > { %v3321_v22 = vpop.f32.mrb[14].mxu1  ;;  %v2519_v25 = vadd.f32 %v2511_v38, %v2320_v54  ;;  %v2321_v28 = vadd.f32 %v2943_v61, %v2306_v19  ;;  %v2498_v11 = vmul.f32 %v2956_v52, %v2472_v14 }
 0x187   : > { %v2475_v1 = vpop.f32.mrb[15].mxu1  ;;  %v2517_v12 = vadd.f32 %v2509_v15, %v2318_v9  ;;  %v2319_v21 = vadd.f32 %v2943_v61, %v2304_v60  ;;  %v3296_v36 = vpop.f32.mrb[4].mxu0  ;;  %v2515_v31 = vadd.f32 %v4156_v3, %v2500_v20  ;;  %v2501_v41 = vmul.f32 %v3321_v22, %v2956_v52 }
 0x188   : > { %v2527_v30 = vmax.f32 %v2519_v25, 0.0  ;;  %v2520_v35 = vadd.f32 %v2512_v32, %v2321_v28  ;;  %v3326_v13 = vadd.f32 %v3296_v36, %v3176_v29  ;;  %v2273_v48 = vpop.f32.mrb[5].mxu0  ;;  %v2513_v51 = vadd.f32 %v4156_v3, %v2498_v11 }
 0x189   : > { %v2525_v57 = vmax.f32 %v2517_v12, 0.0  ;;  %v2518_v37 = vadd.f32 %v2510_v33, %v2319_v21  ;;  %v3327_v39 = vadd.f32 %v2273_v48, %v1118_v47  ;;  %v3297_v40 = vpop.f32.mrb[6].mxu0  ;;  %v2499_v45 = vmul.f32 %v2956_v52, %v2475_v1 }
 0x18a   : > { %2535 = vst [vmem:[%s4168_s14 + $0x10] sm:$0xff] %v2527_v30  ;;  %v2528_v42 = vmax.f32 %v2520_v35, 0.0  ;;  %v2309_v43 = vmul.f32 %v3326_v13, %v2942_v58  ;;  %v3328_v55 = vadd.f32 %v3297_v40, %v3177_v62  ;;  %v2276_v44 = vpop.f32.mrb[7].mxu0  ;;  %v2516_v62 = vadd.f32 %v4156_v3, %v2501_v41 }
 0x18b   : > { %2533 = vst [vmem:[%s4168_s14] sm:$0xff] %v2525_v57  ;;  %v2526_v0 = vmax.f32 %v2518_v37, 0.0  ;;  %v2307_v18 = vmul.f32 %v3327_v39, %v2942_v58  ;;  %v3329_v2 = vadd.f32 %v2276_v44, %v4145_v23  ;;  %v2514_v4 = vadd.f32 %v4156_v3, %v2499_v45 }
 0x18c   : > { %2536 = vst [vmem:[%s4168_s14 + $0x18] sm:$0xff] %v2528_v42  ;;  %v2324_v29 = vadd.f32 %v2943_v61, %v2309_v43  ;;  %v2310_v47 = vmul.f32 %v3328_v55, %v2942_v58 }
 0x18d   : > { %2534 = vst [vmem:[%s4168_s14 + $0x8] sm:$0xff] %v2526_v0  ;;  %v2322_v63 = vadd.f32 %v2943_v61, %v2307_v18  ;;  %v2308_v49 = vmul.f32 %v3329_v2, %v2942_v58 }
 0x18e   : > { %v2523_v8 = vadd.f32 %v2515_v31, %v2324_v29  ;;  %v2325_v53 = vadd.f32 %v2943_v61, %v2310_v47 }
 0x18f   : > { %v2521_v24 = vadd.f32 %v2513_v51, %v2322_v63  ;;  %v2323_v26 = vadd.f32 %v2943_v61, %v2308_v49 }
 0x190   : > { %v2531_v23 = vmax.f32 %v2523_v8, 0.0  ;;  %v2524_v52 = vadd.f32 %v2516_v62, %v2325_v53 }
 0x191   : > { %v2529_v5 = vmax.f32 %v2521_v24, 0.0  ;;  %v2522_v7 = vadd.f32 %v2514_v4, %v2323_v26 }
 0x192   : > { %2539 = vst [vmem:[%s4168_s14 + $0x30] sm:$0xff] %v2531_v23  ;;  %v2532_v59 = vmax.f32 %v2524_v52, 0.0 }
 0x193   : > { %2537 = vst [vmem:[%s4168_s14 + $0x20] sm:$0xff] %v2529_v5  ;;  %v2530_v34 = vmax.f32 %v2522_v7, 0.0 }
 0x194   : > { %2540 = vst [vmem:[%s4168_s14 + $0x38] sm:$0xff] %v2532_v59 }
 0x195   : > { %2538 = vst [vmem:[%s4168_s14 + $0x28] sm:$0xff] %v2530_v34 }
 0x196 PF: > { %s18_s27 = sadd.s32 1, %s3497_s27  }
 0x197   : > { %p15_p4 = scmp.ge.s32.totalorder %s18_s27, 4  }
 0x199   :  { %17 = sbr.rel (!%p15_p4) target bundleno = 1 (0x1), region = 95 }

</bundles_post_ra>
